<compile_context>
chip_gen: v7x
topology: tpu7x:2x2x1
jax: 0.10.0
libtpu: 0.0.40
codegen_flags: <defaults>
</compile_context>

<pallas_src>
import jax
import jax.numpy as jnp
from jax import lax
from jax.experimental import pallas as pl
from jax.experimental.pallas import tpu as pltpu


# ----------------------------- Pallas kernel --------------------------------

def lfmco_kernel(x_ref, h0_ref,
                 wir_ref, wiz_ref, win_ref,
                 br_ref, bz_ref, bin_ref,
                 whr_ref, whz_ref, whn_ref, bhn_ref,
                 wf_ref, bf_ref, w5_ref, b5_ref,
                 out_ref, h_out_ref,
                 gir_scr, giz_scr, gin_scr, hs_scr):
    TB = x_ref.shape[0]          # T * Bp
    Bp = h0_ref.shape[0]
    T = TB // Bp

    # ---- Stage 1: input projection for all timesteps at once (off the serial
    # path). Gate order follows PyTorch nn.GRU: [r | z | n]. The r/z gate biases
    # of b_hh were folded into br/bz by the wrapper.
    x = x_ref[...]                                                  # (T*Bp, D_in)
    gir_scr[...] = jnp.dot(x, wir_ref[...],
                           preferred_element_type=jnp.float32) + br_ref[...]
    giz_scr[...] = jnp.dot(x, wiz_ref[...],
                           preferred_element_type=jnp.float32) + bz_ref[...]
    gin_scr[...] = jnp.dot(x, win_ref[...],
                           preferred_element_type=jnp.float32) + bin_ref[...]

    whr = whr_ref[...]; whz = whz_ref[...]; whn = whn_ref[...]      # (H, H) each
    bhn = bhn_ref[...]                                              # (1, H)

    # ---- Stage 2: serial GRU recurrence. Only h @ W_hh + gate math remains on
    # the critical path; h_t goes to VMEM scratch for the batched head.
    def step(t, h):
        s = pl.multiple_of(t * Bp, Bp)
        gh_r = jnp.dot(h, whr, preferred_element_type=jnp.float32)
        gh_z = jnp.dot(h, whz, preferred_element_type=jnp.float32)
        gh_n = jnp.dot(h, whn, preferred_element_type=jnp.float32) + bhn
        r = jax.nn.sigmoid(gir_scr[pl.ds(s, Bp), :] + gh_r)
        z = jax.nn.sigmoid(giz_scr[pl.ds(s, Bp), :] + gh_z)
        n = jnp.tanh(gin_scr[pl.ds(s, Bp), :] + r * gh_n)
        h_new = (1.0 - z) * n + z * h                               # (Bp, H)
        hs_scr[pl.ds(s, Bp), :] = h_new
        return h_new

    h_final = lax.fori_loop(0, T, step, h0_ref[...], unroll=True)
    h_out_ref[...] = h_final.astype(h_out_ref.dtype)

    # ---- Stage 3: fused MLP head on the full (T*Bp, H) slab, single bulk store.
    hs = hs_scr[...]
    y = jnp.dot(hs, wf_ref[...], preferred_element_type=jnp.float32) + bf_ref[...]
    y = jnp.maximum(y, 0.0)
    y = jnp.dot(y, w5_ref[...], preferred_element_type=jnp.float32) + b5_ref[...]
    out_ref[...] = y.astype(out_ref.dtype)


# ------------------------------- Wrapper -------------------------------------

def lfmco_forward(params, x, h=None):
    """x: (B, T, D_in) float32, h: optional (1, B, H). Returns (y, h_out)
    with y: (B, T, D_out) and h_out: (1, B, H), matching the PyTorch module."""
    B, T, D_in = x.shape
    H = params["w_hh"].shape[0]             # (H, 3H), already (in, out) layout
    D_out = params["w5"].shape[1]

    # Pad batch to a sublane multiple so per-timestep tiles are (Bp, H) aligned.
    Bp = max(8, ((B + 7) // 8) * 8)

    # --- split GRU weights per gate (PyTorch order: r, z, n), fold r/z hidden
    # biases into the precomputed input-projection biases.
    w_ih, w_hh = params["w_ih"], params["w_hh"]          # (D_in,3H), (H,3H)
    b_ih, b_hh = params["b_ih"], params["b_hh"]          # (1,3H), (1,3H)
    wir, wiz, win = w_ih[:, 0:H], w_ih[:, H:2 * H], w_ih[:, 2 * H:3 * H]
    whr, whz, whn = w_hh[:, 0:H], w_hh[:, H:2 * H], w_hh[:, 2 * H:3 * H]
    br = b_ih[:, 0:H] + b_hh[:, 0:H]
    bz = b_ih[:, H:2 * H] + b_hh[:, H:2 * H]
    bin_ = b_ih[:, 2 * H:3 * H]
    bhn = b_hh[:, 2 * H:3 * H]

    # --- collapse the activation-free linear chain fc..fc4 into one matrix.
    wf = params["w1"] @ params["w2"] @ params["w3"] @ params["w4"]        # (H, 8)
    bf = ((params["b1"] @ params["w2"] + params["b2"]) @ params["w3"]
          + params["b3"]) @ params["w4"] + params["b4"]                   # (1, 8)

    # --- build time-major, batch-padded inputs.
    if h is None:
        h0 = jnp.zeros((Bp, H), jnp.float32)
    else:
        h0 = jnp.zeros((Bp, H), jnp.float32).at[:B].set(
            h.reshape(B, H).astype(jnp.float32))

    x_tm = jnp.transpose(x, (1, 0, 2)).astype(jnp.float32)        # (T, B, D_in)
    x_pad = jnp.zeros((T, Bp, D_in), jnp.float32).at[:, :B].set(x_tm)
    x_flat = x_pad.reshape(T * Bp, D_in)                          # (T*Bp, D_in)

    vmem = pl.BlockSpec(memory_space=pltpu.MemorySpace.VMEM)
    args = (x_flat, h0,
            wir, wiz, win, br, bz, bin_,
            whr, whz, whn, bhn,
            wf, bf, params["w5"], params["b5"])

    y_flat, h_out = pl.pallas_call(
        lfmco_kernel,
        out_shape=(jax.ShapeDtypeStruct((T * Bp, D_out), jnp.float32),
                   jax.ShapeDtypeStruct((Bp, H), jnp.float32)),
        in_specs=[vmem] * len(args),
        out_specs=(vmem, vmem),
        scratch_shapes=[pltpu.VMEM((T * Bp, H), jnp.float32)] * 4,
    )(*args)

    y = jnp.transpose(y_flat.reshape(T, Bp, D_out)[:, :B], (1, 0, 2))  # (B,T,Dout)
    return y, h_out[:B][None]                                          # (1,B,H)


# ------------------------- Deterministic parameters ---------------------------

def init_params(key, input_dim, output_dim, hidden_dim=64):
    """PyTorch-shaped params, stored pre-transposed ((in, out)) for the kernel."""
    def unif(k, shape, bound):
        return jax.random.uniform(k, shape, jnp.float32, -bound, bound)

    keys = jax.random.split(key, 14)
    kg = 1.0 / jnp.sqrt(hidden_dim)
    # nn.GRU params (PyTorch layout), then transpose for (in, out) matmuls.
    w_ih = unif(keys[0], (3 * hidden_dim, input_dim), kg)
    w_hh = unif(keys[1], (3 * hidden_dim, hidden_dim), kg)
    b_ih = unif(keys[2], (3 * hidden_dim,), kg)
    b_hh = unif(keys[3], (3 * hidden_dim,), kg)

    def linear(kw, kb, fin, fout):
        bnd = 1.0 / jnp.sqrt(fin)
        w = unif(kw, (fout, fin), bnd)   # PyTorch (out, in)
        b = unif(kb, (fout,), bnd)
        return w.T, b[None, :]           # kernel layout (in, out), (1, out)

    w1, b1 = linear(keys[4], keys[5], hidden_dim, 32)
    w2, b2 = linear(keys[6], keys[7], 32, 24)
    w3, b3 = linear(keys[8], keys[9], 24, 16)
    w4, b4 = linear(keys[10], keys[11], 16, 8)
    w5, b5 = linear(keys[12], keys[13], 8, output_dim)

    return dict(w_ih=w_ih.T, w_hh=w_hh.T, b_ih=b_ih[None, :], b_hh=b_hh[None, :],
                w1=w1, b1=b1, w2=w2, b2=b2, w3=w3, b3=b3, w4=w4, b4=b4,
                w5=w5, b5=b5)


# ----------------------------- Pure-JAX reference -----------------------------

def lfmco_reference(params, x, h=None):
    B, T, _ = x.shape
    H = params["w_hh"].shape[0]
    h0 = jnp.zeros((B, H), jnp.float32) if h is None else h.reshape(B, H)

    def step(h, x_t):
        gi = x_t @ params["w_ih"] + params["b_ih"]
        gh = h @ params["w_hh"] + params["b_hh"]
        r = jax.nn.sigmoid(gi[:, :H] + gh[:, :H])
        z = jax.nn.sigmoid(gi[:, H:2 * H] + gh[:, H:2 * H])
        n = jnp.tanh(gi[:, 2 * H:] + r * gh[:, 2 * H:])
        h_new = (1.0 - z) * n + z * h
        return h_new, h_new

    h_final, hs = lax.scan(step, h0, jnp.transpose(x, (1, 0, 2)))
    y = jnp.transpose(hs, (1, 0, 2))
    y = y @ params["w1"] + params["b1"]
    y = y @ params["w2"] + params["b2"]
    y = y @ params["w3"] + params["b3"]
    y = y @ params["w4"] + params["b4"]
    y = jnp.maximum(y, 0.0)
    y = y @ params["w5"] + params["b5"]
    return y, h_final[None]


# ---------------------------------- Main --------------------------------------

if __name__ == "__main__":
    key = jax.random.PRNGKey(0)
    B, T, D_in, D_out, H = 2, 8, 16, 4, 64

    k_param, k_x = jax.random.split(key)
    params = init_params(k_param, D_in, D_out, hidden_dim=H)
    x = jax.random.normal(k_x, (B, T, D_in), jnp.float32)

    y, h_out = lfmco_forward(params, x)
    jax.block_until_ready((y, h_out))

    y_ref, h_ref = lfmco_reference(params, x)
    assert y.shape == (B, T, D_out) and h_out.shape == (1, B, H)
    assert jnp.allclose(y, y_ref, atol=1e-4, rtol=1e-4)
    assert jnp.allclose(h_out, h_ref, atol=1e-4, rtol=1e-4)

    print("KERNEL_OK")
</pallas_src>

<mosaic_0001>
module attributes {stable_mosaic.version = 11 : i64} {
  func.func @lfmco_kernel(%arg0: memref<64x16xf32, #tpu.memory_space<vmem>>, %arg1: memref<8x64xf32, #tpu.memory_space<vmem>>, %arg2: memref<16x64xf32, #tpu.memory_space<vmem>>, %arg3: memref<16x64xf32, #tpu.memory_space<vmem>>, %arg4: memref<16x64xf32, #tpu.memory_space<vmem>>, %arg5: memref<1x64xf32, #tpu.memory_space<vmem>>, %arg6: memref<1x64xf32, #tpu.memory_space<vmem>>, %arg7: memref<1x64xf32, #tpu.memory_space<vmem>>, %arg8: memref<64x64xf32, #tpu.memory_space<vmem>>, %arg9: memref<64x64xf32, #tpu.memory_space<vmem>>, %arg10: memref<64x64xf32, #tpu.memory_space<vmem>>, %arg11: memref<1x64xf32, #tpu.memory_space<vmem>>, %arg12: memref<64x8xf32, #tpu.memory_space<vmem>>, %arg13: memref<1x8xf32, #tpu.memory_space<vmem>>, %arg14: memref<8x4xf32, #tpu.memory_space<vmem>>, %arg15: memref<1x4xf32, #tpu.memory_space<vmem>>, %arg16: memref<64x4xf32, #tpu.memory_space<vmem>>, %arg17: memref<8x64xf32, #tpu.memory_space<vmem>>, %arg18: memref<64x64xf32, #tpu.memory_space<vmem>>, %arg19: memref<64x64xf32, #tpu.memory_space<vmem>>, %arg20: memref<64x64xf32, #tpu.memory_space<vmem>>, %arg21: memref<64x64xf32, #tpu.memory_space<vmem>>) attributes {dimension_semantics = [], scalar_prefetch = 0 : i64, scratch_operands = 4 : i64, tpu.core_type = #tpu.core_type<tc>} {
    %c0 = arith.constant 0 : index
    %c0_0 = arith.constant 0 : index
    %0 = vector.load %arg0[%c0, %c0_0] : memref<64x16xf32, #tpu.memory_space<vmem>>, vector<64x16xf32>
    %c0_1 = arith.constant 0 : index
    %c0_2 = arith.constant 0 : index
    %1 = vector.load %arg2[%c0_1, %c0_2] : memref<16x64xf32, #tpu.memory_space<vmem>>, vector<16x64xf32>
    %cst = arith.constant dense<0.000000e+00> : vector<64x64xf32>
    %2 = tpu.matmul %0, %1, %cst {dimension_numbers = #tpu.dot_dimension_numbers<[1], [0], [0], [1], [0, 0, 1, 1], [], []>} : vector<64x16xf32>, vector<16x64xf32>, vector<64x64xf32> -> vector<64x64xf32>
    %c0_3 = arith.constant 0 : index
    %c0_4 = arith.constant 0 : index
    %3 = vector.load %arg5[%c0_3, %c0_4] : memref<1x64xf32, #tpu.memory_space<vmem>>, vector<1x64xf32>
    %4 = vector.broadcast %3 : vector<1x64xf32> to vector<64x64xf32>
    %5 = arith.addf %2, %4 : vector<64x64xf32>
    %c0_5 = arith.constant 0 : index
    %c0_6 = arith.constant 0 : index
    %6 = vector.load %arg18[%c0_5, %c0_6] : memref<64x64xf32, #tpu.memory_space<vmem>>, vector<64x64xf32>
    tpu.vector_store %arg18[%c0_5, %c0_6], %5 {strides = array<i32>} : memref<64x64xf32, #tpu.memory_space<vmem>>, vector<64x64xf32>,
    %c0_7 = arith.constant 0 : index
    %c0_8 = arith.constant 0 : index
    %7 = vector.load %arg3[%c0_7, %c0_8] : memref<16x64xf32, #tpu.memory_space<vmem>>, vector<16x64xf32>
    %cst_9 = arith.constant dense<0.000000e+00> : vector<64x64xf32>
    %8 = tpu.matmul %0, %7, %cst_9 {dimension_numbers = #tpu.dot_dimension_numbers<[1], [0], [0], [1], [0, 0, 1, 1], [], []>} : vector<64x16xf32>, vector<16x64xf32>, vector<64x64xf32> -> vector<64x64xf32>
    %c0_10 = arith.constant 0 : index
    %c0_11 = arith.constant 0 : index
    %9 = vector.load %arg6[%c0_10, %c0_11] : memref<1x64xf32, #tpu.memory_space<vmem>>, vector<1x64xf32>
    %10 = vector.broadcast %9 : vector<1x64xf32> to vector<64x64xf32>
    %11 = arith.addf %8, %10 : vector<64x64xf32>
    %c0_12 = arith.constant 0 : index
    %c0_13 = arith.constant 0 : index
    %12 = vector.load %arg19[%c0_12, %c0_13] : memref<64x64xf32, #tpu.memory_space<vmem>>, vector<64x64xf32>
    tpu.vector_store %arg19[%c0_12, %c0_13], %11 {strides = array<i32>} : memref<64x64xf32, #tpu.memory_space<vmem>>, vector<64x64xf32>,
    %c0_14 = arith.constant 0 : index
    %c0_15 = arith.constant 0 : index
    %13 = vector.load %arg4[%c0_14, %c0_15] : memref<16x64xf32, #tpu.memory_space<vmem>>, vector<16x64xf32>
    %cst_16 = arith.constant dense<0.000000e+00> : vector<64x64xf32>
    %14 = tpu.matmul %0, %13, %cst_16 {dimension_numbers = #tpu.dot_dimension_numbers<[1], [0], [0], [1], [0, 0, 1, 1], [], []>} : vector<64x16xf32>, vector<16x64xf32>, vector<64x64xf32> -> vector<64x64xf32>
    %c0_17 = arith.constant 0 : index
    %c0_18 = arith.constant 0 : index
    %15 = vector.load %arg7[%c0_17, %c0_18] : memref<1x64xf32, #tpu.memory_space<vmem>>, vector<1x64xf32>
    %16 = vector.broadcast %15 : vector<1x64xf32> to vector<64x64xf32>
    %17 = arith.addf %14, %16 : vector<64x64xf32>
    %c0_19 = arith.constant 0 : index
    %c0_20 = arith.constant 0 : index
    %18 = vector.load %arg20[%c0_19, %c0_20] : memref<64x64xf32, #tpu.memory_space<vmem>>, vector<64x64xf32>
    tpu.vector_store %arg20[%c0_19, %c0_20], %17 {strides = array<i32>} : memref<64x64xf32, #tpu.memory_space<vmem>>, vector<64x64xf32>,
    %c0_21 = arith.constant 0 : index
    %c0_22 = arith.constant 0 : index
    %19 = vector.load %arg8[%c0_21, %c0_22] : memref<64x64xf32, #tpu.memory_space<vmem>>, vector<64x64xf32>
    %c0_23 = arith.constant 0 : index
    %c0_24 = arith.constant 0 : index
    %20 = vector.load %arg9[%c0_23, %c0_24] : memref<64x64xf32, #tpu.memory_space<vmem>>, vector<64x64xf32>
    %c0_25 = arith.constant 0 : index
    %c0_26 = arith.constant 0 : index
    %21 = vector.load %arg10[%c0_25, %c0_26] : memref<64x64xf32, #tpu.memory_space<vmem>>, vector<64x64xf32>
    %c0_27 = arith.constant 0 : index
    %c0_28 = arith.constant 0 : index
    %22 = vector.load %arg11[%c0_27, %c0_28] : memref<1x64xf32, #tpu.memory_space<vmem>>, vector<1x64xf32>
    %c0_29 = arith.constant 0 : index
    %c0_30 = arith.constant 0 : index
    %23 = vector.load %arg1[%c0_29, %c0_30] : memref<8x64xf32, #tpu.memory_space<vmem>>, vector<8x64xf32>
    %c0_i32 = arith.constant 0 : i32
    %c8_i32 = arith.constant 8 : i32
    %24 = arith.muli %c0_i32, %c8_i32 : i32
    %25 = tpu.assume_multiple %24, 8 : i32
    %cst_31 = arith.constant dense<0.000000e+00> : vector<8x64xf32>
    %26 = tpu.matmul %23, %19, %cst_31 {dimension_numbers = #tpu.dot_dimension_numbers<[1], [0], [0], [1], [0, 0, 1, 1], [], []>} : vector<8x64xf32>, vector<64x64xf32>, vector<8x64xf32> -> vector<8x64xf32>
    %cst_32 = arith.constant dense<0.000000e+00> : vector<8x64xf32>
    %27 = tpu.matmul %23, %20, %cst_32 {dimension_numbers = #tpu.dot_dimension_numbers<[1], [0], [0], [1], [0, 0, 1, 1], [], []>} : vector<8x64xf32>, vector<64x64xf32>, vector<8x64xf32> -> vector<8x64xf32>
    %cst_33 = arith.constant dense<0.000000e+00> : vector<8x64xf32>
    %28 = tpu.matmul %23, %21, %cst_33 {dimension_numbers = #tpu.dot_dimension_numbers<[1], [0], [0], [1], [0, 0, 1, 1], [], []>} : vector<8x64xf32>, vector<64x64xf32>, vector<8x64xf32> -> vector<8x64xf32>
    %29 = vector.broadcast %22 : vector<1x64xf32> to vector<8x64xf32>
    %30 = arith.addf %28, %29 : vector<8x64xf32>
    %31 = arith.index_cast %25 : i32 to index
    %c0_34 = arith.constant 0 : index
    %32 = vector.load %arg18[%31, %c0_34] : memref<64x64xf32, #tpu.memory_space<vmem>>, vector<8x64xf32>
    %33 = arith.addf %32, %26 : vector<8x64xf32>
    %34 = arith.negf %33 : vector<8x64xf32>
    %35 = math.exp %34 : vector<8x64xf32>
    %cst_35 = arith.constant 1.000000e+00 : f32
    %36 = vector.broadcast %cst_35 : f32 to vector<8x64xf32>
    %37 = arith.addf %36, %35 : vector<8x64xf32>
    %38 = arith.divf %36, %37 : vector<8x64xf32>
    %39 = arith.index_cast %25 : i32 to index
    %c0_36 = arith.constant 0 : index
    %40 = vector.load %arg19[%39, %c0_36] : memref<64x64xf32, #tpu.memory_space<vmem>>, vector<8x64xf32>
    %41 = arith.addf %40, %27 : vector<8x64xf32>
    %42 = arith.negf %41 : vector<8x64xf32>
    %43 = math.exp %42 : vector<8x64xf32>
    %cst_37 = arith.constant 1.000000e+00 : f32
    %44 = vector.broadcast %cst_37 : f32 to vector<8x64xf32>
    %45 = arith.addf %44, %43 : vector<8x64xf32>
    %46 = arith.divf %44, %45 : vector<8x64xf32>
    %47 = arith.index_cast %25 : i32 to index
    %c0_38 = arith.constant 0 : index
    %48 = vector.load %arg20[%47, %c0_38] : memref<64x64xf32, #tpu.memory_space<vmem>>, vector<8x64xf32>
    %49 = arith.mulf %38, %30 : vector<8x64xf32>
    %50 = arith.addf %48, %49 : vector<8x64xf32>
    %51 = math.tanh %50 : vector<8x64xf32>
    %cst_39 = arith.constant 1.000000e+00 : f32
    %52 = vector.broadcast %cst_39 : f32 to vector<8x64xf32>
    %53 = arith.subf %52, %46 : vector<8x64xf32>
    %54 = arith.mulf %53, %51 : vector<8x64xf32>
    %55 = arith.mulf %46, %23 : vector<8x64xf32>
    %56 = arith.addf %54, %55 : vector<8x64xf32>
    %57 = arith.index_cast %25 : i32 to index
    %c0_40 = arith.constant 0 : index
    %58 = vector.load %arg21[%57, %c0_40] : memref<64x64xf32, #tpu.memory_space<vmem>>, vector<8x64xf32>
    tpu.vector_store %arg21[%57, %c0_40], %56 {strides = array<i32>} : memref<64x64xf32, #tpu.memory_space<vmem>>, vector<8x64xf32>,
    %c1_i32 = arith.constant 1 : i32
    %c8_i32_41 = arith.constant 8 : i32
    %59 = arith.muli %c1_i32, %c8_i32_41 : i32
    %60 = tpu.assume_multiple %59, 8 : i32
    %cst_42 = arith.constant dense<0.000000e+00> : vector<8x64xf32>
    %61 = tpu.matmul %56, %19, %cst_42 {dimension_numbers = #tpu.dot_dimension_numbers<[1], [0], [0], [1], [0, 0, 1, 1], [], []>} : vector<8x64xf32>, vector<64x64xf32>, vector<8x64xf32> -> vector<8x64xf32>
    %cst_43 = arith.constant dense<0.000000e+00> : vector<8x64xf32>
    %62 = tpu.matmul %56, %20, %cst_43 {dimension_numbers = #tpu.dot_dimension_numbers<[1], [0], [0], [1], [0, 0, 1, 1], [], []>} : vector<8x64xf32>, vector<64x64xf32>, vector<8x64xf32> -> vector<8x64xf32>
    %cst_44 = arith.constant dense<0.000000e+00> : vector<8x64xf32>
    %63 = tpu.matmul %56, %21, %cst_44 {dimension_numbers = #tpu.dot_dimension_numbers<[1], [0], [0], [1], [0, 0, 1, 1], [], []>} : vector<8x64xf32>, vector<64x64xf32>, vector<8x64xf32> -> vector<8x64xf32>
    %64 = vector.broadcast %22 : vector<1x64xf32> to vector<8x64xf32>
    %65 = arith.addf %63, %64 : vector<8x64xf32>
    %66 = arith.index_cast %60 : i32 to index
    %c0_45 = arith.constant 0 : index
    %67 = vector.load %arg18[%66, %c0_45] : memref<64x64xf32, #tpu.memory_space<vmem>>, vector<8x64xf32>
    %68 = arith.addf %67, %61 : vector<8x64xf32>
    %69 = arith.negf %68 : vector<8x64xf32>
    %70 = math.exp %69 : vector<8x64xf32>
    %cst_46 = arith.constant 1.000000e+00 : f32
    %71 = vector.broadcast %cst_46 : f32 to vector<8x64xf32>
    %72 = arith.addf %71, %70 : vector<8x64xf32>
    %73 = arith.divf %71, %72 : vector<8x64xf32>
    %74 = arith.index_cast %60 : i32 to index
    %c0_47 = arith.constant 0 : index
    %75 = vector.load %arg19[%74, %c0_47] : memref<64x64xf32, #tpu.memory_space<vmem>>, vector<8x64xf32>
    %76 = arith.addf %75, %62 : vector<8x64xf32>
    %77 = arith.negf %76 : vector<8x64xf32>
    %78 = math.exp %77 : vector<8x64xf32>
    %cst_48 = arith.constant 1.000000e+00 : f32
    %79 = vector.broadcast %cst_48 : f32 to vector<8x64xf32>
    %80 = arith.addf %79, %78 : vector<8x64xf32>
    %81 = arith.divf %79, %80 : vector<8x64xf32>
    %82 = arith.index_cast %60 : i32 to index
    %c0_49 = arith.constant 0 : index
    %83 = vector.load %arg20[%82, %c0_49] : memref<64x64xf32, #tpu.memory_space<vmem>>, vector<8x64xf32>
    %84 = arith.mulf %73, %65 : vector<8x64xf32>
    %85 = arith.addf %83, %84 : vector<8x64xf32>
    %86 = math.tanh %85 : vector<8x64xf32>
    %cst_50 = arith.constant 1.000000e+00 : f32
    %87 = vector.broadcast %cst_50 : f32 to vector<8x64xf32>
    %88 = arith.subf %87, %81 : vector<8x64xf32>
    %89 = arith.mulf %88, %86 : vector<8x64xf32>
    %90 = arith.mulf %81, %56 : vector<8x64xf32>
    %91 = arith.addf %89, %90 : vector<8x64xf32>
    %92 = arith.index_cast %60 : i32 to index
    %c0_51 = arith.constant 0 : index
    %93 = vector.load %arg21[%92, %c0_51] : memref<64x64xf32, #tpu.memory_space<vmem>>, vector<8x64xf32>
    tpu.vector_store %arg21[%92, %c0_51], %91 {strides = array<i32>} : memref<64x64xf32, #tpu.memory_space<vmem>>, vector<8x64xf32>,
    %c2_i32 = arith.constant 2 : i32
    %c8_i32_52 = arith.constant 8 : i32
    %94 = arith.muli %c2_i32, %c8_i32_52 : i32
    %95 = tpu.assume_multiple %94, 8 : i32
    %cst_53 = arith.constant dense<0.000000e+00> : vector<8x64xf32>
    %96 = tpu.matmul %91, %19, %cst_53 {dimension_numbers = #tpu.dot_dimension_numbers<[1], [0], [0], [1], [0, 0, 1, 1], [], []>} : vector<8x64xf32>, vector<64x64xf32>, vector<8x64xf32> -> vector<8x64xf32>
    %cst_54 = arith.constant dense<0.000000e+00> : vector<8x64xf32>
    %97 = tpu.matmul %91, %20, %cst_54 {dimension_numbers = #tpu.dot_dimension_numbers<[1], [0], [0], [1], [0, 0, 1, 1], [], []>} : vector<8x64xf32>, vector<64x64xf32>, vector<8x64xf32> -> vector<8x64xf32>
    %cst_55 = arith.constant dense<0.000000e+00> : vector<8x64xf32>
    %98 = tpu.matmul %91, %21, %cst_55 {dimension_numbers = #tpu.dot_dimension_numbers<[1], [0], [0], [1], [0, 0, 1, 1], [], []>} : vector<8x64xf32>, vector<64x64xf32>, vector<8x64xf32> -> vector<8x64xf32>
    %99 = vector.broadcast %22 : vector<1x64xf32> to vector<8x64xf32>
    %100 = arith.addf %98, %99 : vector<8x64xf32>
    %101 = arith.index_cast %95 : i32 to index
    %c0_56 = arith.constant 0 : index
    %102 = vector.load %arg18[%101, %c0_56] : memref<64x64xf32, #tpu.memory_space<vmem>>, vector<8x64xf32>
    %103 = arith.addf %102, %96 : vector<8x64xf32>
    %104 = arith.negf %103 : vector<8x64xf32>
    %105 = math.exp %104 : vector<8x64xf32>
    %cst_57 = arith.constant 1.000000e+00 : f32
    %106 = vector.broadcast %cst_57 : f32 to vector<8x64xf32>
    %107 = arith.addf %106, %105 : vector<8x64xf32>
    %108 = arith.divf %106, %107 : vector<8x64xf32>
    %109 = arith.index_cast %95 : i32 to index
    %c0_58 = arith.constant 0 : index
    %110 = vector.load %arg19[%109, %c0_58] : memref<64x64xf32, #tpu.memory_space<vmem>>, vector<8x64xf32>
    %111 = arith.addf %110, %97 : vector<8x64xf32>
    %112 = arith.negf %111 : vector<8x64xf32>
    %113 = math.exp %112 : vector<8x64xf32>
    %cst_59 = arith.constant 1.000000e+00 : f32
    %114 = vector.broadcast %cst_59 : f32 to vector<8x64xf32>
    %115 = arith.addf %114, %113 : vector<8x64xf32>
    %116 = arith.divf %114, %115 : vector<8x64xf32>
    %117 = arith.index_cast %95 : i32 to index
    %c0_60 = arith.constant 0 : index
    %118 = vector.load %arg20[%117, %c0_60] : memref<64x64xf32, #tpu.memory_space<vmem>>, vector<8x64xf32>
    %119 = arith.mulf %108, %100 : vector<8x64xf32>
    %120 = arith.addf %118, %119 : vector<8x64xf32>
    %121 = math.tanh %120 : vector<8x64xf32>
    %cst_61 = arith.constant 1.000000e+00 : f32
    %122 = vector.broadcast %cst_61 : f32 to vector<8x64xf32>
    %123 = arith.subf %122, %116 : vector<8x64xf32>
    %124 = arith.mulf %123, %121 : vector<8x64xf32>
    %125 = arith.mulf %116, %91 : vector<8x64xf32>
    %126 = arith.addf %124, %125 : vector<8x64xf32>
    %127 = arith.index_cast %95 : i32 to index
    %c0_62 = arith.constant 0 : index
    %128 = vector.load %arg21[%127, %c0_62] : memref<64x64xf32, #tpu.memory_space<vmem>>, vector<8x64xf32>
    tpu.vector_store %arg21[%127, %c0_62], %126 {strides = array<i32>} : memref<64x64xf32, #tpu.memory_space<vmem>>, vector<8x64xf32>,
    %c3_i32 = arith.constant 3 : i32
    %c8_i32_63 = arith.constant 8 : i32
    %129 = arith.muli %c3_i32, %c8_i32_63 : i32
    %130 = tpu.assume_multiple %129, 8 : i32
    %cst_64 = arith.constant dense<0.000000e+00> : vector<8x64xf32>
    %131 = tpu.matmul %126, %19, %cst_64 {dimension_numbers = #tpu.dot_dimension_numbers<[1], [0], [0], [1], [0, 0, 1, 1], [], []>} : vector<8x64xf32>, vector<64x64xf32>, vector<8x64xf32> -> vector<8x64xf32>
    %cst_65 = arith.constant dense<0.000000e+00> : vector<8x64xf32>
    %132 = tpu.matmul %126, %20, %cst_65 {dimension_numbers = #tpu.dot_dimension_numbers<[1], [0], [0], [1], [0, 0, 1, 1], [], []>} : vector<8x64xf32>, vector<64x64xf32>, vector<8x64xf32> -> vector<8x64xf32>
    %cst_66 = arith.constant dense<0.000000e+00> : vector<8x64xf32>
    %133 = tpu.matmul %126, %21, %cst_66 {dimension_numbers = #tpu.dot_dimension_numbers<[1], [0], [0], [1], [0, 0, 1, 1], [], []>} : vector<8x64xf32>, vector<64x64xf32>, vector<8x64xf32> -> vector<8x64xf32>
    %134 = vector.broadcast %22 : vector<1x64xf32> to vector<8x64xf32>
    %135 = arith.addf %133, %134 : vector<8x64xf32>
    %136 = arith.index_cast %130 : i32 to index
    %c0_67 = arith.constant 0 : index
    %137 = vector.load %arg18[%136, %c0_67] : memref<64x64xf32, #tpu.memory_space<vmem>>, vector<8x64xf32>
    %138 = arith.addf %137, %131 : vector<8x64xf32>
    %139 = arith.negf %138 : vector<8x64xf32>
    %140 = math.exp %139 : vector<8x64xf32>
    %cst_68 = arith.constant 1.000000e+00 : f32
    %141 = vector.broadcast %cst_68 : f32 to vector<8x64xf32>
    %142 = arith.addf %141, %140 : vector<8x64xf32>
    %143 = arith.divf %141, %142 : vector<8x64xf32>
    %144 = arith.index_cast %130 : i32 to index
    %c0_69 = arith.constant 0 : index
    %145 = vector.load %arg19[%144, %c0_69] : memref<64x64xf32, #tpu.memory_space<vmem>>, vector<8x64xf32>
    %146 = arith.addf %145, %132 : vector<8x64xf32>
    %147 = arith.negf %146 : vector<8x64xf32>
    %148 = math.exp %147 : vector<8x64xf32>
    %cst_70 = arith.constant 1.000000e+00 : f32
    %149 = vector.broadcast %cst_70 : f32 to vector<8x64xf32>
    %150 = arith.addf %149, %148 : vector<8x64xf32>
    %151 = arith.divf %149, %150 : vector<8x64xf32>
    %152 = arith.index_cast %130 : i32 to index
    %c0_71 = arith.constant 0 : index
    %153 = vector.load %arg20[%152, %c0_71] : memref<64x64xf32, #tpu.memory_space<vmem>>, vector<8x64xf32>
    %154 = arith.mulf %143, %135 : vector<8x64xf32>
    %155 = arith.addf %153, %154 : vector<8x64xf32>
    %156 = math.tanh %155 : vector<8x64xf32>
    %cst_72 = arith.constant 1.000000e+00 : f32
    %157 = vector.broadcast %cst_72 : f32 to vector<8x64xf32>
    %158 = arith.subf %157, %151 : vector<8x64xf32>
    %159 = arith.mulf %158, %156 : vector<8x64xf32>
    %160 = arith.mulf %151, %126 : vector<8x64xf32>
    %161 = arith.addf %159, %160 : vector<8x64xf32>
    %162 = arith.index_cast %130 : i32 to index
    %c0_73 = arith.constant 0 : index
    %163 = vector.load %arg21[%162, %c0_73] : memref<64x64xf32, #tpu.memory_space<vmem>>, vector<8x64xf32>
    tpu.vector_store %arg21[%162, %c0_73], %161 {strides = array<i32>} : memref<64x64xf32, #tpu.memory_space<vmem>>, vector<8x64xf32>,
    %c4_i32 = arith.constant 4 : i32
    %c8_i32_74 = arith.constant 8 : i32
    %164 = arith.muli %c4_i32, %c8_i32_74 : i32
    %165 = tpu.assume_multiple %164, 8 : i32
    %cst_75 = arith.constant dense<0.000000e+00> : vector<8x64xf32>
    %166 = tpu.matmul %161, %19, %cst_75 {dimension_numbers = #tpu.dot_dimension_numbers<[1], [0], [0], [1], [0, 0, 1, 1], [], []>} : vector<8x64xf32>, vector<64x64xf32>, vector<8x64xf32> -> vector<8x64xf32>
    %cst_76 = arith.constant dense<0.000000e+00> : vector<8x64xf32>
    %167 = tpu.matmul %161, %20, %cst_76 {dimension_numbers = #tpu.dot_dimension_numbers<[1], [0], [0], [1], [0, 0, 1, 1], [], []>} : vector<8x64xf32>, vector<64x64xf32>, vector<8x64xf32> -> vector<8x64xf32>
    %cst_77 = arith.constant dense<0.000000e+00> : vector<8x64xf32>
    %168 = tpu.matmul %161, %21, %cst_77 {dimension_numbers = #tpu.dot_dimension_numbers<[1], [0], [0], [1], [0, 0, 1, 1], [], []>} : vector<8x64xf32>, vector<64x64xf32>, vector<8x64xf32> -> vector<8x64xf32>
    %169 = vector.broadcast %22 : vector<1x64xf32> to vector<8x64xf32>
    %170 = arith.addf %168, %169 : vector<8x64xf32>
    %171 = arith.index_cast %165 : i32 to index
    %c0_78 = arith.constant 0 : index
    %172 = vector.load %arg18[%171, %c0_78] : memref<64x64xf32, #tpu.memory_space<vmem>>, vector<8x64xf32>
    %173 = arith.addf %172, %166 : vector<8x64xf32>
    %174 = arith.negf %173 : vector<8x64xf32>
    %175 = math.exp %174 : vector<8x64xf32>
    %cst_79 = arith.constant 1.000000e+00 : f32
    %176 = vector.broadcast %cst_79 : f32 to vector<8x64xf32>
    %177 = arith.addf %176, %175 : vector<8x64xf32>
    %178 = arith.divf %176, %177 : vector<8x64xf32>
    %179 = arith.index_cast %165 : i32 to index
    %c0_80 = arith.constant 0 : index
    %180 = vector.load %arg19[%179, %c0_80] : memref<64x64xf32, #tpu.memory_space<vmem>>, vector<8x64xf32>
    %181 = arith.addf %180, %167 : vector<8x64xf32>
    %182 = arith.negf %181 : vector<8x64xf32>
    %183 = math.exp %182 : vector<8x64xf32>
    %cst_81 = arith.constant 1.000000e+00 : f32
    %184 = vector.broadcast %cst_81 : f32 to vector<8x64xf32>
    %185 = arith.addf %184, %183 : vector<8x64xf32>
    %186 = arith.divf %184, %185 : vector<8x64xf32>
    %187 = arith.index_cast %165 : i32 to index
    %c0_82 = arith.constant 0 : index
    %188 = vector.load %arg20[%187, %c0_82] : memref<64x64xf32, #tpu.memory_space<vmem>>, vector<8x64xf32>
    %189 = arith.mulf %178, %170 : vector<8x64xf32>
    %190 = arith.addf %188, %189 : vector<8x64xf32>
    %191 = math.tanh %190 : vector<8x64xf32>
    %cst_83 = arith.constant 1.000000e+00 : f32
    %192 = vector.broadcast %cst_83 : f32 to vector<8x64xf32>
    %193 = arith.subf %192, %186 : vector<8x64xf32>
    %194 = arith.mulf %193, %191 : vector<8x64xf32>
    %195 = arith.mulf %186, %161 : vector<8x64xf32>
    %196 = arith.addf %194, %195 : vector<8x64xf32>
    %197 = arith.index_cast %165 : i32 to index
    %c0_84 = arith.constant 0 : index
    %198 = vector.load %arg21[%197, %c0_84] : memref<64x64xf32, #tpu.memory_space<vmem>>, vector<8x64xf32>
    tpu.vector_store %arg21[%197, %c0_84], %196 {strides = array<i32>} : memref<64x64xf32, #tpu.memory_space<vmem>>, vector<8x64xf32>,
    %c5_i32 = arith.constant 5 : i32
    %c8_i32_85 = arith.constant 8 : i32
    %199 = arith.muli %c5_i32, %c8_i32_85 : i32
    %200 = tpu.assume_multiple %199, 8 : i32
    %cst_86 = arith.constant dense<0.000000e+00> : vector<8x64xf32>
    %201 = tpu.matmul %196, %19, %cst_86 {dimension_numbers = #tpu.dot_dimension_numbers<[1], [0], [0], [1], [0, 0, 1, 1], [], []>} : vector<8x64xf32>, vector<64x64xf32>, vector<8x64xf32> -> vector<8x64xf32>
    %cst_87 = arith.constant dense<0.000000e+00> : vector<8x64xf32>
    %202 = tpu.matmul %196, %20, %cst_87 {dimension_numbers = #tpu.dot_dimension_numbers<[1], [0], [0], [1], [0, 0, 1, 1], [], []>} : vector<8x64xf32>, vector<64x64xf32>, vector<8x64xf32> -> vector<8x64xf32>
    %cst_88 = arith.constant dense<0.000000e+00> : vector<8x64xf32>
    %203 = tpu.matmul %196, %21, %cst_88 {dimension_numbers = #tpu.dot_dimension_numbers<[1], [0], [0], [1], [0, 0, 1, 1], [], []>} : vector<8x64xf32>, vector<64x64xf32>, vector<8x64xf32> -> vector<8x64xf32>
    %204 = vector.broadcast %22 : vector<1x64xf32> to vector<8x64xf32>
    %205 = arith.addf %203, %204 : vector<8x64xf32>
    %206 = arith.index_cast %200 : i32 to index
    %c0_89 = arith.constant 0 : index
    %207 = vector.load %arg18[%206, %c0_89] : memref<64x64xf32, #tpu.memory_space<vmem>>, vector<8x64xf32>
    %208 = arith.addf %207, %201 : vector<8x64xf32>
    %209 = arith.negf %208 : vector<8x64xf32>
    %210 = math.exp %209 : vector<8x64xf32>
    %cst_90 = arith.constant 1.000000e+00 : f32
    %211 = vector.broadcast %cst_90 : f32 to vector<8x64xf32>
    %212 = arith.addf %211, %210 : vector<8x64xf32>
    %213 = arith.divf %211, %212 : vector<8x64xf32>
    %214 = arith.index_cast %200 : i32 to index
    %c0_91 = arith.constant 0 : index
    %215 = vector.load %arg19[%214, %c0_91] : memref<64x64xf32, #tpu.memory_space<vmem>>, vector<8x64xf32>
    %216 = arith.addf %215, %202 : vector<8x64xf32>
    %217 = arith.negf %216 : vector<8x64xf32>
    %218 = math.exp %217 : vector<8x64xf32>
    %cst_92 = arith.constant 1.000000e+00 : f32
    %219 = vector.broadcast %cst_92 : f32 to vector<8x64xf32>
    %220 = arith.addf %219, %218 : vector<8x64xf32>
    %221 = arith.divf %219, %220 : vector<8x64xf32>
    %222 = arith.index_cast %200 : i32 to index
    %c0_93 = arith.constant 0 : index
    %223 = vector.load %arg20[%222, %c0_93] : memref<64x64xf32, #tpu.memory_space<vmem>>, vector<8x64xf32>
    %224 = arith.mulf %213, %205 : vector<8x64xf32>
    %225 = arith.addf %223, %224 : vector<8x64xf32>
    %226 = math.tanh %225 : vector<8x64xf32>
    %cst_94 = arith.constant 1.000000e+00 : f32
    %227 = vector.broadcast %cst_94 : f32 to vector<8x64xf32>
    %228 = arith.subf %227, %221 : vector<8x64xf32>
    %229 = arith.mulf %228, %226 : vector<8x64xf32>
    %230 = arith.mulf %221, %196 : vector<8x64xf32>
    %231 = arith.addf %229, %230 : vector<8x64xf32>
    %232 = arith.index_cast %200 : i32 to index
    %c0_95 = arith.constant 0 : index
    %233 = vector.load %arg21[%232, %c0_95] : memref<64x64xf32, #tpu.memory_space<vmem>>, vector<8x64xf32>
    tpu.vector_store %arg21[%232, %c0_95], %231 {strides = array<i32>} : memref<64x64xf32, #tpu.memory_space<vmem>>, vector<8x64xf32>,
    %c6_i32 = arith.constant 6 : i32
    %c8_i32_96 = arith.constant 8 : i32
    %234 = arith.muli %c6_i32, %c8_i32_96 : i32
    %235 = tpu.assume_multiple %234, 8 : i32
    %cst_97 = arith.constant dense<0.000000e+00> : vector<8x64xf32>
    %236 = tpu.matmul %231, %19, %cst_97 {dimension_numbers = #tpu.dot_dimension_numbers<[1], [0], [0], [1], [0, 0, 1, 1], [], []>} : vector<8x64xf32>, vector<64x64xf32>, vector<8x64xf32> -> vector<8x64xf32>
    %cst_98 = arith.constant dense<0.000000e+00> : vector<8x64xf32>
    %237 = tpu.matmul %231, %20, %cst_98 {dimension_numbers = #tpu.dot_dimension_numbers<[1], [0], [0], [1], [0, 0, 1, 1], [], []>} : vector<8x64xf32>, vector<64x64xf32>, vector<8x64xf32> -> vector<8x64xf32>
    %cst_99 = arith.constant dense<0.000000e+00> : vector<8x64xf32>
    %238 = tpu.matmul %231, %21, %cst_99 {dimension_numbers = #tpu.dot_dimension_numbers<[1], [0], [0], [1], [0, 0, 1, 1], [], []>} : vector<8x64xf32>, vector<64x64xf32>, vector<8x64xf32> -> vector<8x64xf32>
    %239 = vector.broadcast %22 : vector<1x64xf32> to vector<8x64xf32>
    %240 = arith.addf %238, %239 : vector<8x64xf32>
    %241 = arith.index_cast %235 : i32 to index
    %c0_100 = arith.constant 0 : index
    %242 = vector.load %arg18[%241, %c0_100] : memref<64x64xf32, #tpu.memory_space<vmem>>, vector<8x64xf32>
    %243 = arith.addf %242, %236 : vector<8x64xf32>
    %244 = arith.negf %243 : vector<8x64xf32>
    %245 = math.exp %244 : vector<8x64xf32>
    %cst_101 = arith.constant 1.000000e+00 : f32
    %246 = vector.broadcast %cst_101 : f32 to vector<8x64xf32>
    %247 = arith.addf %246, %245 : vector<8x64xf32>
    %248 = arith.divf %246, %247 : vector<8x64xf32>
    %249 = arith.index_cast %235 : i32 to index
    %c0_102 = arith.constant 0 : index
    %250 = vector.load %arg19[%249, %c0_102] : memref<64x64xf32, #tpu.memory_space<vmem>>, vector<8x64xf32>
    %251 = arith.addf %250, %237 : vector<8x64xf32>
    %252 = arith.negf %251 : vector<8x64xf32>
    %253 = math.exp %252 : vector<8x64xf32>
    %cst_103 = arith.constant 1.000000e+00 : f32
    %254 = vector.broadcast %cst_103 : f32 to vector<8x64xf32>
    %255 = arith.addf %254, %253 : vector<8x64xf32>
    %256 = arith.divf %254, %255 : vector<8x64xf32>
    %257 = arith.index_cast %235 : i32 to index
    %c0_104 = arith.constant 0 : index
    %258 = vector.load %arg20[%257, %c0_104] : memref<64x64xf32, #tpu.memory_space<vmem>>, vector<8x64xf32>
    %259 = arith.mulf %248, %240 : vector<8x64xf32>
    %260 = arith.addf %258, %259 : vector<8x64xf32>
    %261 = math.tanh %260 : vector<8x64xf32>
    %cst_105 = arith.constant 1.000000e+00 : f32
    %262 = vector.broadcast %cst_105 : f32 to vector<8x64xf32>
    %263 = arith.subf %262, %256 : vector<8x64xf32>
    %264 = arith.mulf %263, %261 : vector<8x64xf32>
    %265 = arith.mulf %256, %231 : vector<8x64xf32>
    %266 = arith.addf %264, %265 : vector<8x64xf32>
    %267 = arith.index_cast %235 : i32 to index
    %c0_106 = arith.constant 0 : index
    %268 = vector.load %arg21[%267, %c0_106] : memref<64x64xf32, #tpu.memory_space<vmem>>, vector<8x64xf32>
    tpu.vector_store %arg21[%267, %c0_106], %266 {strides = array<i32>} : memref<64x64xf32, #tpu.memory_space<vmem>>, vector<8x64xf32>,
    %c7_i32 = arith.constant 7 : i32
    %c8_i32_107 = arith.constant 8 : i32
    %269 = arith.muli %c7_i32, %c8_i32_107 : i32
    %270 = tpu.assume_multiple %269, 8 : i32
    %cst_108 = arith.constant dense<0.000000e+00> : vector<8x64xf32>
    %271 = tpu.matmul %266, %19, %cst_108 {dimension_numbers = #tpu.dot_dimension_numbers<[1], [0], [0], [1], [0, 0, 1, 1], [], []>} : vector<8x64xf32>, vector<64x64xf32>, vector<8x64xf32> -> vector<8x64xf32>
    %cst_109 = arith.constant dense<0.000000e+00> : vector<8x64xf32>
    %272 = tpu.matmul %266, %20, %cst_109 {dimension_numbers = #tpu.dot_dimension_numbers<[1], [0], [0], [1], [0, 0, 1, 1], [], []>} : vector<8x64xf32>, vector<64x64xf32>, vector<8x64xf32> -> vector<8x64xf32>
    %cst_110 = arith.constant dense<0.000000e+00> : vector<8x64xf32>
    %273 = tpu.matmul %266, %21, %cst_110 {dimension_numbers = #tpu.dot_dimension_numbers<[1], [0], [0], [1], [0, 0, 1, 1], [], []>} : vector<8x64xf32>, vector<64x64xf32>, vector<8x64xf32> -> vector<8x64xf32>
    %274 = vector.broadcast %22 : vector<1x64xf32> to vector<8x64xf32>
    %275 = arith.addf %273, %274 : vector<8x64xf32>
    %276 = arith.index_cast %270 : i32 to index
    %c0_111 = arith.constant 0 : index
    %277 = vector.load %arg18[%276, %c0_111] : memref<64x64xf32, #tpu.memory_space<vmem>>, vector<8x64xf32>
    %278 = arith.addf %277, %271 : vector<8x64xf32>
    %279 = arith.negf %278 : vector<8x64xf32>
    %280 = math.exp %279 : vector<8x64xf32>
    %cst_112 = arith.constant 1.000000e+00 : f32
    %281 = vector.broadcast %cst_112 : f32 to vector<8x64xf32>
    %282 = arith.addf %281, %280 : vector<8x64xf32>
    %283 = arith.divf %281, %282 : vector<8x64xf32>
    %284 = arith.index_cast %270 : i32 to index
    %c0_113 = arith.constant 0 : index
    %285 = vector.load %arg19[%284, %c0_113] : memref<64x64xf32, #tpu.memory_space<vmem>>, vector<8x64xf32>
    %286 = arith.addf %285, %272 : vector<8x64xf32>
    %287 = arith.negf %286 : vector<8x64xf32>
    %288 = math.exp %287 : vector<8x64xf32>
    %cst_114 = arith.constant 1.000000e+00 : f32
    %289 = vector.broadcast %cst_114 : f32 to vector<8x64xf32>
    %290 = arith.addf %289, %288 : vector<8x64xf32>
    %291 = arith.divf %289, %290 : vector<8x64xf32>
    %292 = arith.index_cast %270 : i32 to index
    %c0_115 = arith.constant 0 : index
    %293 = vector.load %arg20[%292, %c0_115] : memref<64x64xf32, #tpu.memory_space<vmem>>, vector<8x64xf32>
    %294 = arith.mulf %283, %275 : vector<8x64xf32>
    %295 = arith.addf %293, %294 : vector<8x64xf32>
    %296 = math.tanh %295 : vector<8x64xf32>
    %cst_116 = arith.constant 1.000000e+00 : f32
    %297 = vector.broadcast %cst_116 : f32 to vector<8x64xf32>
    %298 = arith.subf %297, %291 : vector<8x64xf32>
    %299 = arith.mulf %298, %296 : vector<8x64xf32>
    %300 = arith.mulf %291, %266 : vector<8x64xf32>
    %301 = arith.addf %299, %300 : vector<8x64xf32>
    %302 = arith.index_cast %270 : i32 to index
    %c0_117 = arith.constant 0 : index
    %303 = vector.load %arg21[%302, %c0_117] : memref<64x64xf32, #tpu.memory_space<vmem>>, vector<8x64xf32>
    tpu.vector_store %arg21[%302, %c0_117], %301 {strides = array<i32>} : memref<64x64xf32, #tpu.memory_space<vmem>>, vector<8x64xf32>,
    %c8_i32_118 = arith.constant 8 : i32
    %c0_119 = arith.constant 0 : index
    %c0_120 = arith.constant 0 : index
    %304 = vector.load %arg17[%c0_119, %c0_120] : memref<8x64xf32, #tpu.memory_space<vmem>>, vector<8x64xf32>
    tpu.vector_store %arg17[%c0_119, %c0_120], %301 {strides = array<i32>} : memref<8x64xf32, #tpu.memory_space<vmem>>, vector<8x64xf32>,
    %c0_121 = arith.constant 0 : index
    %c0_122 = arith.constant 0 : index
    %305 = vector.load %arg21[%c0_121, %c0_122] : memref<64x64xf32, #tpu.memory_space<vmem>>, vector<64x64xf32>
    %c0_123 = arith.constant 0 : index
    %c0_124 = arith.constant 0 : index
    %306 = vector.load %arg12[%c0_123, %c0_124] : memref<64x8xf32, #tpu.memory_space<vmem>>, vector<64x8xf32>
    %cst_125 = arith.constant dense<0.000000e+00> : vector<64x8xf32>
    %307 = tpu.matmul %305, %306, %cst_125 {dimension_numbers = #tpu.dot_dimension_numbers<[1], [0], [0], [1], [0, 0, 1, 1], [], []>} : vector<64x64xf32>, vector<64x8xf32>, vector<64x8xf32> -> vector<64x8xf32>
    %c0_126 = arith.constant 0 : index
    %c0_127 = arith.constant 0 : index
    %308 = vector.load %arg13[%c0_126, %c0_127] : memref<1x8xf32, #tpu.memory_space<vmem>>, vector<1x8xf32>
    %309 = vector.broadcast %308 : vector<1x8xf32> to vector<64x8xf32>
    %310 = arith.addf %307, %309 : vector<64x8xf32>
    %cst_128 = arith.constant 0.000000e+00 : f32
    %311 = vector.broadcast %cst_128 : f32 to vector<64x8xf32>
    %312 = arith.maximumf %310, %311 : vector<64x8xf32>
    %c0_129 = arith.constant 0 : index
    %c0_130 = arith.constant 0 : index
    %313 = vector.load %arg14[%c0_129, %c0_130] : memref<8x4xf32, #tpu.memory_space<vmem>>, vector<8x4xf32>
    %cst_131 = arith.constant dense<0.000000e+00> : vector<64x4xf32>
    %314 = tpu.matmul %312, %313, %cst_131 {dimension_numbers = #tpu.dot_dimension_numbers<[1], [0], [0], [1], [0, 0, 1, 1], [], []>} : vector<64x8xf32>, vector<8x4xf32>, vector<64x4xf32> -> vector<64x4xf32>
    %c0_132 = arith.constant 0 : index
    %c0_133 = arith.constant 0 : index
    %315 = vector.load %arg15[%c0_132, %c0_133] : memref<1x4xf32, #tpu.memory_space<vmem>>, vector<1x4xf32>
    %316 = vector.broadcast %315 : vector<1x4xf32> to vector<64x4xf32>
    %317 = arith.addf %314, %316 : vector<64x4xf32>
    %c0_134 = arith.constant 0 : index
    %c0_135 = arith.constant 0 : index
    %318 = vector.load %arg16[%c0_134, %c0_135] : memref<64x4xf32, #tpu.memory_space<vmem>>, vector<64x4xf32>
    tpu.vector_store %arg16[%c0_134, %c0_135], %317 {strides = array<i32>} : memref<64x4xf32, #tpu.memory_space<vmem>>, vector<64x4xf32>,
    return
  }
}

</mosaic_0001>

<bundles_post_ra>
// kernel: tpu_custom_call.1
= control target key start
LH: loop header
LB: loop body
LE: loop exit
PB: predicated region body
PF: predicated region fallthrough
CT: control target
= control target key end

     0   :  { %s5108_s0 = inlined_call_operand.vmem [shape: f32[64,16], index: 0, kind: input, shape index: {}]   ;;  %s5109_s1 = inlined_call_operand.hbm [shape: f32[8,64], index: 1, kind: input, shape index: {}]   ;;  %s5110_s2 = inlined_call_operand.hbm [shape: f32[16,64], index: 2, kind: input, shape index: {}]   ;;  %s5111_s3 = inlined_call_operand.hbm [shape: f32[16,64], index: 3, kind: input, shape index: {}]   ;;  %s5112_s4 = inlined_call_operand.hbm [shape: f32[16,64], index: 4, kind: input, shape index: {}]   ;;  %s5113_s5 = inlined_call_operand.vmem [shape: f32[1,64], index: 5, kind: input, shape index: {}]   ;;  %s5114_s6 = inlined_call_operand.hbm [shape: f32[1,64], index: 6, kind: input, shape index: {}]   ;;  %s5115_s7 = inlined_call_operand.hbm [shape: f32[1,64], index: 7, kind: input, shape index: {}]   ;;  %s5116_s8 = inlined_call_operand.vmem [shape: f32[64,64], index: 8, kind: input, shape index: {}]   ;;  %s5117_s9 = inlined_call_operand.vmem [shape: f32[64,64], index: 9, kind: input, shape index: {}]   ;;  %s5118_s10 = inlined_call_operand.vmem [shape: f32[64,64], index: 10, kind: input, shape index: {}]   ;;  %s5119_s11 = inlined_call_operand.hbm [shape: f32[1,64], index: 11, kind: input, shape index: {}]   ;;  %s5120_s12 = inlined_call_operand.vmem [shape: f32[64,8], index: 12, kind: input, shape index: {}]   ;;  %s5121_s13 = inlined_call_operand.vmem [shape: f32[1,8], index: 13, kind: input, shape index: {}]   ;;  %s5122_s14 = inlined_call_operand.vmem [shape: f32[8,4], index: 14, kind: input, shape index: {}]   ;;  %s5123_s15 = inlined_call_operand.vmem [shape: f32[1,4], index: 15, kind: input, shape index: {}]   ;;  %s5124_s16 = inlined_call_operand.vmem [shape: f32[64,4], index: 16, kind: output, shape index: {0}]   ;;  %s5125_s17 = inlined_call_operand.hbm [shape: f32[8,64], index: 17, kind: output, shape index: {1}]  }
   0x1   :  { %5129 = sst [smem:[#allocation24_spill]] %s5108_s0 }
   0x2   :  { %5130 = sst [smem:[#allocation25_spill]] %s5109_s1 }
   0x3   :  { %5131 = sst [smem:[#allocation26_spill]] %s5125_s17 }
   0x4   :  { %23 = vsyncpa [#allocation7], 0 }
   0x5   :  { %24 = vsyncpa [#allocation10], 0 }
   0x6   :  { %25 = vsyncpa [#allocation13], 0 }
   0x7   :  { %26 = vsyncpa [#allocation16], 0 }
   0x8   :  { %27 = vsyncpa [#allocation8], 0  ;;  %s4335_s24 = smov [#allocation9]   ;;  %s4149_s28 = scalar_lea.hbm %s5110_s2, 256 }
   0x9   :  { %s45_s25 = sshll.u32 %s4335_s24, 4  ;;  %p4150_p0 = scmp.ne.s32.totalorder %s5110_s2, %s4149_s28  ;;  %s46_s25 = int_to_ptr.vmem [resolvable:$true] %s45_s25 }
   0xa   :  { %p4153_p1 = scmp.lt.u32.totalorder %s4149_s28, %s5110_s2 }
   0xc   :  { %p4155_p2 = pnand %p4153_p1, %p4150_p0 }
   0xe   :  { %4158 = shalt.err (!%p4155_p2)
}
   0xf   :  { %s4159_s19 = scalar_lea.vmem %s46_s25, 256  ;;  %p4164_p4 = scmp.lt.s32.totalorder %s46_s25, %s46_s25 }
  0x10   :  { %p4160_p3 = scmp.ne.s32.totalorder %s46_s25, %s4159_s19  ;;  %p4165_p5 = scmp.lt.s32.totalorder %s4159_s19, %s4159_s19 }
  0x12   :  { %p4166_p6 = por %p4165_p5, %p4164_p4 }
  0x14   :  { %p4167_p7 = pnand %p4166_p6, %p4160_p3 }
  0x16   :  { %4170 = shalt.err (!%p4167_p7)
}
  0x17   :  { %s4336_s1 = smov 128   ;;  %s4337_s20 = smov 8  }
  0x18   :  { %51 = dma.hbm_to_vmem [thread:$0]  %s5110_s2, 256, %s46_s25, [#allocation10], %s4336_s1, %s4336_s1, %s4337_s20  }
  0x19   :  { %s4338_s23 = smov [#allocation12]   ;;  %s4339_s26 = smov [#allocation15]  }
  0x1a   :  { %s69_s24 = sshll.u32 %s4338_s23, 4  ;;  %s94_s27 = sshll.u32 %s4339_s26, 4  ;;  %s70_s24 = int_to_ptr.vmem [resolvable:$true] %s69_s24  ;;  %s95_s27 = int_to_ptr.vmem [resolvable:$true] %s94_s27 }
  0x1b   :  { %s4171_s0 = scalar_lea.hbm %s5112_s4, 256 }
  0x1c   :  { %p4172_p8 = scmp.ne.s32.totalorder %s5112_s4, %s4171_s0  ;;  %p4175_p9 = scmp.lt.u32.totalorder %s4171_s0, %s5112_s4 }
  0x1e   :  { %p4177_p10 = pnand %p4175_p9, %p4172_p8 }
  0x20   :  { %4180 = shalt.err (!%p4177_p10)
}
  0x21   :  { %s4181_s2 = scalar_lea.vmem %s70_s24, 256  ;;  %p4186_p12 = scmp.lt.s32.totalorder %s70_s24, %s70_s24 }
  0x22   :  { %p4182_p11 = scmp.ne.s32.totalorder %s70_s24, %s4181_s2  ;;  %p4187_p13 = scmp.lt.s32.totalorder %s4181_s2, %s4181_s2 }
  0x24   :  { %p4188_p0 = por %p4187_p13, %p4186_p12 }
  0x26   :  { %p4189_p1 = pnand %p4188_p0, %p4182_p11 }
  0x28   :  { %4192 = shalt.err (!%p4189_p1)
}
  0x29   :  { %75 = dma.hbm_to_vmem [thread:$0]  %s5112_s4, 256, %s70_s24, [#allocation13], %s4336_s1, %s4336_s1, %s4337_s20  }
  0x2a   :  { %s4193_s23 = scalar_lea.hbm %s5115_s7, 16 }
  0x2b   :  { %p4194_p2 = scmp.ne.s32.totalorder %s5115_s7, %s4193_s23  ;;  %p4197_p3 = scmp.lt.u32.totalorder %s4193_s23, %s5115_s7 }
  0x2d   :  { %p4199_p4 = pnand %p4197_p3, %p4194_p2 }
  0x2f   :  { %4202 = shalt.err (!%p4199_p4)
}
  0x30   :  { %s4203_s30 = scalar_lea.vmem %s95_s27, 16  ;;  %s4207_s18 = scalar_lea.vmem %s95_s27, 32 }
  0x31   :  { %p4204_p5 = scmp.ne.s32.totalorder %s95_s27, %s4203_s30  ;;  %p4208_p6 = scmp.lt.s32.totalorder %s95_s27, %s95_s27 }
  0x32   :  { %p4209_p7 = scmp.lt.s32.totalorder %s4207_s18, %s4203_s30 }
  0x34   :  { %p4210_p8 = por %p4209_p7, %p4208_p6 }
  0x36   :  { %p4211_p9 = pnand %p4210_p8, %p4204_p5 }
  0x38   :  { %4214 = shalt.err (!%p4211_p9)
}
  0x39   :  { %97 = dma.hbm_to_vmem [thread:$0]  %s5115_s7, 16, %s95_s27, [#allocation16]  }
  0x3a   :  { %s4340_s19 = smov [#allocation6]   ;;  %s4341_s25 = smov [#allocation11]  }
  0x3b   :  { %s36_s2 = sshll.u32 %s4340_s19, 4  ;;  %s57_s21 = sshll.u32 %s4341_s25, 4  ;;  %s37_s2 = int_to_ptr.vmem [resolvable:$true] %s36_s2  ;;  %s58_s21 = int_to_ptr.vmem [resolvable:$true] %s57_s21 }
  0x3c   :  { %s5132_s23 = sld [smem:[#allocation25_spill]] }
  0x42   :  { %s4215_s26 = scalar_lea.hbm %s5132_s23, 128 }
  0x43   :  { %p4216_p10 = scmp.ne.s32.totalorder %s5132_s23, %s4215_s26  ;;  %p4219_p11 = scmp.lt.u32.totalorder %s4215_s26, %s5132_s23 }
  0x45   :  { %p4221_p12 = pnand %p4219_p11, %p4216_p10 }
  0x47   :  { %4224 = shalt.err (!%p4221_p12)
}
  0x48   :  { %s4225_s7 = scalar_lea.vmem %s37_s2, 128  ;;  %p4230_p0 = scmp.lt.s32.totalorder %s37_s2, %s37_s2 }
  0x49   :  { %p4226_p13 = scmp.ne.s32.totalorder %s37_s2, %s4225_s7  ;;  %p4231_p1 = scmp.lt.s32.totalorder %s4225_s7, %s4225_s7 }
  0x4b   :  { %p4232_p2 = por %p4231_p1, %p4230_p0 }
  0x4d   :  { %p4233_p3 = pnand %p4232_p2, %p4226_p13 }
  0x4f   :  { %4236 = shalt.err (!%p4233_p3)
}
  0x50   :  { %39 = dma.hbm_to_vmem [thread:$0]  %s5132_s23, 128, %s37_s2, [#allocation7]  }
  0x51   :  { %s4237_s19 = scalar_lea.hbm %s5111_s3, 256 }
  0x52   :  { %p4238_p4 = scmp.ne.s32.totalorder %s5111_s3, %s4237_s19  ;;  %p4241_p5 = scmp.lt.u32.totalorder %s4237_s19, %s5111_s3 }
  0x54   :  { %p4243_p6 = pnand %p4241_p5, %p4238_p4 }
  0x56   :  { %4246 = shalt.err (!%p4243_p6)
}
  0x57   :  { %s4247_s28 = scalar_lea.vmem %s58_s21, 256  ;;  %p4252_p8 = scmp.lt.s32.totalorder %s58_s21, %s58_s21 }
  0x58   :  { %p4248_p7 = scmp.ne.s32.totalorder %s58_s21, %s4247_s28  ;;  %p4253_p9 = scmp.lt.s32.totalorder %s4247_s28, %s4247_s28 }
  0x5a   :  { %p4254_p10 = por %p4253_p9, %p4252_p8 }
  0x5c   :  { %p4255_p11 = pnand %p4254_p10, %p4248_p7 }
  0x5e   :  { %4258 = shalt.err (!%p4255_p11)
}
  0x5f   :  { %63 = dma.hbm_to_vmem [thread:$0]  %s5111_s3, 256, %s58_s21, [#allocation10], %s4336_s1, %s4336_s1, %s4337_s20  }
  0x60   :  { %s4342_s29 = smov [#allocation14]   ;;  %s4343_s30 = smov [#allocation17]  }
  0x61   :  { %s84_s0 = sshll.u32 %s4342_s29, 4  ;;  %s110_s7 = sshll.u32 %s4343_s30, 4  ;;  %s85_s0 = int_to_ptr.vmem [resolvable:$true] %s84_s0  ;;  %s111_s7 = int_to_ptr.vmem [resolvable:$true] %s110_s7 }
  0x62   :  { %s4259_s4 = scalar_lea.hbm %s5114_s6, 16 }
  0x63   :  { %p4260_p12 = scmp.ne.s32.totalorder %s5114_s6, %s4259_s4  ;;  %p4263_p13 = scmp.lt.u32.totalorder %s4259_s4, %s5114_s6 }
  0x65   :  { %p4265_p0 = pnand %p4263_p13, %p4260_p12 }
  0x67   :  { %4268 = shalt.err (!%p4265_p0)
}
  0x68   :  { %s4269_s3 = scalar_lea.vmem %s85_s0, 16  ;;  %s4273_s1 = scalar_lea.vmem %s85_s0, 32 }
  0x69   :  { %p4270_p1 = scmp.ne.s32.totalorder %s85_s0, %s4269_s3  ;;  %p4274_p2 = scmp.lt.s32.totalorder %s85_s0, %s85_s0 }
  0x6a   :  { %p4275_p3 = scmp.lt.s32.totalorder %s4273_s1, %s4269_s3 }
  0x6c   :  { %p4276_p4 = por %p4275_p3, %p4274_p2 }
  0x6e   :  { %p4277_p5 = pnand %p4276_p4, %p4270_p1 }
  0x70   :  { %4280 = shalt.err (!%p4277_p5)
}
  0x71   :  { %87 = dma.hbm_to_vmem [thread:$0]  %s5114_s6, 16, %s85_s0, [#allocation13]  }
  0x72   :  { %s4281_s28 = scalar_lea.hbm %s5119_s11, 16 }
  0x73   :  { %p4282_p6 = scmp.ne.s32.totalorder %s5119_s11, %s4281_s28  ;;  %p4285_p7 = scmp.lt.u32.totalorder %s4281_s28, %s5119_s11 }
  0x75   :  { %p4287_p8 = pnand %p4285_p7, %p4282_p6 }
  0x77   :  { %4290 = shalt.err (!%p4287_p8)
}
  0x78   :  { %s4291_s27 = scalar_lea.vmem %s111_s7, 16  ;;  %s4295_s18 = scalar_lea.vmem %s111_s7, 32 }
  0x79   :  { %p4292_p9 = scmp.ne.s32.totalorder %s111_s7, %s4291_s27  ;;  %p4296_p10 = scmp.lt.s32.totalorder %s111_s7, %s111_s7 }
  0x7a   :  { %p4297_p11 = scmp.lt.s32.totalorder %s4295_s18, %s4291_s27 }
  0x7c   :  { %p4298_p12 = por %p4297_p11, %p4296_p10 }
  0x7e   :  { %p4299_p13 = pnand %p4298_p12, %p4292_p9 }
  0x80   :  { %4302 = shalt.err (!%p4299_p13)
}
  0x81   :  { %113 = dma.hbm_to_vmem [thread:$0]  %s5119_s11, 16, %s111_s7, [#allocation16]  }
  0x82   :  { %4325 = dma.done.wait [#allocation7], 128  }
  0x83   :  { %4326 = vsyncadd [#allocation7], 4294967168 }
  0x84   :  { %4327 = dma.done.wait [#allocation10], 512  }
  0x85   :  { %4328 = vsyncadd [#allocation10], 4294966784 }
  0x86   :  { %4329 = dma.done.wait [#allocation13], 272  }
  0x87   :  { %4330 = vsyncadd [#allocation13], 4294967024 }
  0x88   :  { %4331 = dma.done.wait [#allocation16], 32  }
  0x89   :  { %4332 = vsyncadd [#allocation16], 4294967264  ;;  %vm160_vm0 = vcmask 130048   ;;  %v151_v0 = vld [vmem:[#allocation9] sm:$0xff]  ;;  %v152_v1 = vld [vmem:[#allocation9 + $0x8] sm:$0xff]  ;;  %s5133_s19 = sld [smem:[#allocation24_spill]] }
  0x8a   :  { %v299_v2 = vld [vmem:[#allocation11] sm:$0xff]  ;;  %v3740_v3 = vpack.c.bf16 %v152_v1, %v151_v0  ;;  %v300_v4 = vld [vmem:[#allocation11 + $0x8] sm:$0xff]  ;;  %v421_v7 = vld [vmem:[#allocation12] sm:$0xff]  ;;  %v4344_v14 = vmov 0.0|0.0   ;;  %vm4345_vm1 = vmmov 0   ;;  %v4346_v35 = vmov 0.0  }
  0x8b   :  { %v3744_v6 = vpack.c.bf16 %v300_v4, %v299_v2  ;;  %v422_v8 = vld [vmem:[#allocation12 + $0x8] sm:$0xff]  ;;  %v543_v9 = vld [vmem:[%s5116_s8] sm:$0xff]  ;;  %v544_v11 = vld [vmem:[%s5116_s8 + $0x8] sm:$0xff]  ;;  %vm290_vm2 = vcmask 523264   ;;  %vm2676_vm3 = vcmask 64512   ;;  %vm2806_vm4 = vcmask 31744  }
  0x8c   :  { %3741 = vmatprep.subr.bf16.mxu0 %v3740_v3  ;;  %v3748_v10 = vpack.c.bf16 %v422_v8, %v421_v7  ;;  %v4545_v13 = vpack.c.bf16 %v544_v11, %v543_v9  ;;  %v545_v16 = vld [vmem:[%s5116_s8 + $0x10] sm:$0xff]  ;;  %v546_v17 = vld [vmem:[%s5116_s8 + $0x18] sm:$0xff]  ;;  %v547_v21 = vld [vmem:[%s5116_s8 + $0x20] sm:$0xff]  ;;  %s4347_s4 = smov [#allocation18]  }
  0x8d   :  { %3745 = vmatprep.subr.bf16.mxu1 %v3744_v6  ;;  %3743 = vmatpush3.bf16.msra.mxu0 %v3740_v3  ;;  %v4564_v19 = vpack.c.bf16 %v546_v17, %v545_v16  ;;  %v548_v22 = vld [vmem:[%s5116_s8 + $0x28] sm:$0xff]  ;;  %v549_v26 = vld [vmem:[%s5116_s8 + $0x30] sm:$0xff]  ;;  %v550_v27 = vld [vmem:[%s5116_s8 + $0x38] sm:$0xff]  ;;  %s2823_s24 = sshll.u32 %s4347_s4, 4  ;;  %s2824_s24 = int_to_ptr.vmem [resolvable:$true] %s2823_s24 }
  0x8e   :  { %3747 = vmatpush3.bf16.msra.mxu1 %v3744_v6  ;;  %3749 = vmatprep.subr.bf16.mxu0 %v3748_v10  ;;  %v4586_v24 = vpack.c.bf16 %v548_v22, %v547_v21  ;;  %v4606_v29 = vpack.c.bf16 %v550_v27, %v549_v26  ;;  %v551_v30 = vld [vmem:[%s5117_s9] sm:$0xff]  ;;  %v552_v31 = vld [vmem:[%s5117_s9 + $0x8] sm:$0xff]  ;;  %v553_v37 = vld [vmem:[%s5117_s9 + $0x10] sm:$0xff]  ;;  %s4303_s11 = scalar_lea.vmem %s2824_s24, 128  ;;  %p4308_p1 = scmp.lt.s32.totalorder %s2824_s24, %s2824_s24 }
  0x8f   :  { %v143_v5 = vld [vmem:[%s5133_s19] sm:$0xff]  ;;  %v144_v12 = vld [vmem:[%s5133_s19 + $0x8] sm:$0xff]  ;;  %3752 = vmatprep.subr.bf16.mxu1 %v4344_v14  ;;  %v145_v15 = vld [vmem:[%s5133_s19 + $0x10] sm:$0xff]  ;;  %v4624_v34 = vpack.c.bf16 %v552_v31, %v551_v30  ;;  %p4304_p0 = scmp.ne.s32.totalorder %s2824_s24, %s4303_s11  ;;  %p4309_p2 = scmp.lt.s32.totalorder %s4303_s11, %s4303_s11 }
  0x90   :  { %3198 = vmatprep.mubr.msk.f32.mxu0 %vm160_vm0, %v143_v5  ;;  %3214 = vmatprep.mubr.msk.f32.mxu1 %vm160_vm0, %v143_v5  ;;  %v146_v18 = vld [vmem:[%s5133_s19 + $0x18] sm:$0xff]  ;;  %v147_v20 = vld [vmem:[%s5133_s19 + $0x20] sm:$0xff]  ;;  %v148_v23 = vld [vmem:[%s5133_s19 + $0x28] sm:$0xff] }
  0x91   :  { %3199 = vmatmul.mubr.msk.f32.vlgmr.msra.gmra.mrb[0].mxu0 %vm160_vm0, %v144_v12  ;;  %3215 = vmatmul.mubr.msk.f32.vlgmr.msra.gmra.mrb[0].mxu1 %vm160_vm0, %v144_v12  ;;  %v149_v25 = vld [vmem:[%s5133_s19 + $0x30] sm:$0xff]  ;;  %v150_v28 = vld [vmem:[%s5133_s19 + $0x38] sm:$0xff]  ;;  %v559_v32 = vld [vmem:[%s5118_s10] sm:$0xff]  ;;  %p4310_p3 = por %p4309_p2, %p4308_p1 }
  0x92   :  { %3751 = vmatpush3.bf16.msra.mxu0 %v3748_v10  ;;  %3754 = vmatpush3.bf16.msra.mxu1 %v4545_v13  ;;  %v560_v33 = vld [vmem:[%s5118_s10 + $0x8] sm:$0xff]  ;;  %v4629_v36 = vld [vmem:[#allocation6] sm:$0xff]  ;;  %v554_v38 = vld [vmem:[%s5117_s9 + $0x18] sm:$0xff] }
  0x93   :  { %3201 = vmatprep.mubr.msk.f32.mxu0 %vm160_vm0, %v145_v15  ;;  %3217 = vmatprep.mubr.msk.f32.mxu1 %vm160_vm0, %v145_v15  ;;  %v4638_v39 = vpack.c.bf16 %v560_v33, %v559_v32  ;;  %v561_v40 = vld [vmem:[%s5118_s10 + $0x10] sm:$0xff]  ;;  %v562_v41 = vld [vmem:[%s5118_s10 + $0x18] sm:$0xff]  ;;  %v4650_v42 = vpack.c.bf16 %v554_v38, %v553_v37  ;;  %v555_v43 = vld [vmem:[%s5117_s9 + $0x20] sm:$0xff]  ;;  %p4311_p4 = pnand %p4310_p3, %p4304_p0 }
  0x94   :  { %3755 = vmatprep.subr.bf16.mxu1 %v4344_v14  ;;  %3764 = vmatprep.subr.bf16.mxu0 %v4344_v14  ;;  %v556_v44 = vld [vmem:[%s5117_s9 + $0x28] sm:$0xff]  ;;  %v4661_v45 = vpack.c.bf16 %v562_v41, %v561_v40  ;;  %v563_v46 = vld [vmem:[%s5118_s10 + $0x20] sm:$0xff]  ;;  %v557_v49 = vld [vmem:[%s5117_s9 + $0x30] sm:$0xff] }
  0x95   :  { %3202 = vmatmul.mubr.msk.f32.gmra.mrb[2].mxu0 %vm160_vm0, %v146_v18  ;;  %3218 = vmatmul.mubr.msk.f32.gmra.mrb[2].mxu1 %vm160_vm0, %v146_v18  ;;  %v564_v47 = vld [vmem:[%s5118_s10 + $0x28] sm:$0xff]  ;;  %v4675_v48 = vpack.c.bf16 %v556_v44, %v555_v43  ;;  %v558_v50 = vld [vmem:[%s5117_s9 + $0x38] sm:$0xff]  ;;  %v565_v52 = vld [vmem:[%s5118_s10 + $0x30] sm:$0xff] }
  0x96   :  { %3204 = vmatprep.mubr.msk.f32.mxu0 %vm160_vm0, %v147_v20  ;;  %3757 = vmatpush3.bf16.msra.mxu1 %v4564_v19  ;;  %v4685_v51 = vpack.c.bf16 %v564_v47, %v563_v46  ;;  %v566_v53 = vld [vmem:[%s5118_s10 + $0x38] sm:$0xff]  ;;  %v4697_v54 = vpack.c.bf16 %v558_v50, %v557_v49  ;;  %v2837_v56 = vld [vmem:[%s5113_s5] ss:$0 sm:$0xff] }
  0x97   :  { %3220 = vmatprep.mubr.msk.f32.mxu1 %vm160_vm0, %v147_v20  ;;  %3758 = vmatprep.subr.bf16.mxu1 %v4344_v14  ;;  %v4701_v55 = vpack.c.bf16 %v566_v53, %v565_v52  ;;  %v2846_v57 = vld [vmem:[#allocation14] ss:$0 sm:$0xff]  ;;  %v2855_v30 = vld [vmem:[#allocation15] ss:$0 sm:$0xff] }
  0x99   :  { %3205 = vmatmul.mubr.msk.f32.gmra.mrb[4].mxu0 %vm160_vm0, %v148_v23  ;;  %3221 = vmatmul.mubr.msk.f32.gmra.mrb[4].mxu1 %vm160_vm0, %v148_v23 }
  0x9a   :  { %3207 = vmatprep.mubr.msk.f32.mxu0 %vm160_vm0, %v149_v25  ;;  %3760 = vmatpush3.bf16.msra.mxu1 %v4586_v24 }
  0x9b   :  { %3223 = vmatprep.mubr.msk.f32.mxu1 %vm160_vm0, %v149_v25  ;;  %3761 = vmatprep.subr.bf16.mxu1 %v4344_v14 }
  0x9d   :  { %3208 = vmatmul.mubr.msk.f32.gmra.mrb[6].mxu0 %vm160_vm0, %v150_v28  ;;  %3224 = vmatmul.mubr.msk.f32.gmra.mrb[6].mxu1 %vm160_vm0, %v150_v28 }
  0x9e   :  { %3230 = vmatprep.mubr.msk.f32.mxu0 %vm160_vm0, %v143_v5  ;;  %3763 = vmatpush3.bf16.msra.mxu1 %v4606_v29 }
  0x9f   :  { %3258 = vmatprep.mubr.msk.f32.mxu1 %vm4345_vm1, %v4346_v35  ;;  %3776 = vmatprep.subr.bf16.mxu1 %v4344_v14 }
  0xa1   :  { %3231 = vmatmul.mubr.msk.f32.vlgmr.msra.gmra.mrb[8].mxu0 %vm160_vm0, %v144_v12  ;;  %3259 = vmatmul.mubr.msk.f32.vlgmr.msra.gmra.mrb[8].mxu1 %vm290_vm2, %v4629_v36 }
  0xa2   :  { %3766 = vmatpush3.bf16.msra.mxu0 %v4624_v34  ;;  %3233 = vmatprep.mubr.msk.f32.mxu0 %vm160_vm0, %v145_v15 }
  0xa3   :  { %3767 = vmatprep.subr.bf16.mxu0 %v4344_v14  ;;  %3778 = vmatpush3.bf16.msra.mxu1 %v4638_v39 }
  0xa4   :  { %3296 = vmatprep.mubr.msk.f32.mxu1 %vm4345_vm1, %v4346_v35  ;;  %3779 = vmatprep.subr.bf16.mxu1 %v4344_v14 }
  0xa5   :  { %3234 = vmatmul.mubr.msk.f32.gmra.mrb[10].mxu0 %vm160_vm0, %v146_v18 }
  0xa6   :  { %3769 = vmatpush3.bf16.msra.mxu0 %v4650_v42  ;;  %3236 = vmatprep.mubr.msk.f32.mxu0 %vm160_vm0, %v147_v20 }
  0xa7   :  { %3770 = vmatprep.subr.bf16.mxu0 %v4344_v14  ;;  %3781 = vmatpush3.bf16.msra.mxu1 %v4661_v45 }
  0xa8   :  { %3782 = vmatprep.subr.bf16.mxu1 %v4344_v14 }
  0xa9   :  { %3237 = vmatmul.mubr.msk.f32.gmra.mrb[12].mxu0 %vm160_vm0, %v148_v23 }
  0xaa   :  { %3772 = vmatpush3.bf16.msra.mxu0 %v4675_v48  ;;  %3239 = vmatprep.mubr.msk.f32.mxu0 %vm160_vm0, %v149_v25 }
  0xab   :  { %3773 = vmatprep.subr.bf16.mxu0 %v4344_v14  ;;  %3784 = vmatpush3.bf16.msra.mxu1 %v4685_v51 }
  0xac   :  { %3785 = vmatprep.subr.bf16.mxu1 %v4344_v14 }
  0xad   :  { %3240 = vmatmul.mubr.msk.f32.gmra.mrb[14].mxu0 %vm160_vm0, %v150_v28 }
  0xae   :  { %3775 = vmatpush3.bf16.msra.mxu0 %v4697_v54  ;;  %3277 = vmatprep.mubr.msk.f32.mxu0 %vm4345_vm1, %v4346_v35 }
  0xaf   :  { %3788 = vmatprep.subr.bf16.mxu0 %v4344_v14  ;;  %3787 = vmatpush3.bf16.msra.mxu1 %v4701_v55 }
  0xb0   :  { %3800 = vmatprep.subr.bf16.mxu1 %v4344_v14 }
  0xb1   :  { %3278 = vmatmul.mubr.msk.f32.vlgmr.msra.gmra.mrb[16].mxu0 %vm290_vm2, %v4629_v36 }
  0xb2   :  { %3790 = vmatpush3.bf16.msra.mxu0 %v4545_v13  ;;  %3315 = vmatprep.mubr.msk.f32.mxu0 %vm4345_vm1, %v4346_v35 }
  0xb3   :  { %3297 = vmatmul.mubr.msk.f32.vlgmr.msra.gmra.mrb[10].mxu1 %vm290_vm2, %v4629_v36  ;;  %3791 = vmatprep.subr.bf16.mxu0 %v4344_v14 }
  0xb4   :  { %3802 = vmatpush3.bf16.msra.mxu1 %v4624_v34  ;;  %3334 = vmatprep.mubr.msk.f32.mxu1 %vm4345_vm1, %v4346_v35 }
  0xb5   :  { %3803 = vmatprep.subr.bf16.mxu1 %v4344_v14 }
  0xb6   :  { %3793 = vmatpush3.bf16.msra.mxu0 %v4564_v19 }
  0xb7   :  { %3794 = vmatprep.subr.bf16.mxu0 %v4344_v14 }
  0xb8   :  { %3805 = vmatpush3.bf16.msra.mxu1 %v4650_v42 }
  0xb9   :  { %3806 = vmatprep.subr.bf16.mxu1 %v4344_v14 }
  0xba   :  { %3796 = vmatpush3.bf16.msra.mxu0 %v4586_v24 }
  0xbb   :  { %3797 = vmatprep.subr.bf16.mxu0 %v4344_v14 }
  0xbc   :  { %3808 = vmatpush3.bf16.msra.mxu1 %v4675_v48 }
  0xbd   :  { %3809 = vmatprep.subr.bf16.mxu1 %v4344_v14 }
  0xbe   :  { %3799 = vmatpush3.bf16.msra.mxu0 %v4606_v29 }
  0xbf   :  { %3812 = vmatprep.subr.bf16.mxu0 %v4344_v14 }
  0xc0   :  { %3811 = vmatpush3.bf16.msra.mxu1 %v4697_v54 }
  0xc1   :  { %3824 = vmatprep.subr.bf16.mxu1 %v4344_v14 }
 0x164   :  { %v3200_v58 = vpop.f32.mrb[0].mxu0  ;;  %v3216_v61 = vpop.f32.mrb[0].mxu1 }
 0x165   :  { %v257_v59 = vadd.f32 %v3200_v58, %v2837_v56  ;;  %v251_v60 = vpop.f32.mrb[1].mxu0  ;;  %v380_v63 = vadd.f32 %v3216_v61, %v2846_v57  ;;  %v374_v0 = vpop.f32.mrb[1].mxu1 }
 0x166   :  { %v252_v62 = vadd.f32 %v2837_v56, %v251_v60  ;;  %v375_v1 = vadd.f32 %v2846_v57, %v374_v0 }
 0x167   :  { %292 = vst.msk [vmem:[#allocation2 + $0x8] sm:$0xff] %vm290_vm2, %v257_v59  ;;  %414 = vst.msk [vmem:[#allocation3 + $0x8] sm:$0xff] %vm290_vm2, %v380_v63 }
 0x168   :  { %291 = vst.msk [vmem:[#allocation2] sm:$0xff] %vm290_vm2, %v252_v62  ;;  %v3203_v2 = vpop.f32.mrb[2].mxu0  ;;  %413 = vst.msk [vmem:[#allocation3] sm:$0xff] %vm290_vm2, %v375_v1  ;;  %v3219_v5 = vpop.f32.mrb[2].mxu1 }
 0x169   :  { %v267_v3 = vadd.f32 %v3203_v2, %v2837_v56  ;;  %v261_v4 = vpop.f32.mrb[3].mxu0  ;;  %v390_v7 = vadd.f32 %v3219_v5, %v2846_v57  ;;  %v384_v8 = vpop.f32.mrb[3].mxu1 }
 0x16a   :  { %v262_v6 = vadd.f32 %v2837_v56, %v261_v4  ;;  %v385_v9 = vadd.f32 %v2846_v57, %v384_v8  ;;  %v4762_v8 = vld [vmem:[#allocation17] ss:$0 sm:$0xff] }
 0x16b   :  { %294 = vst.msk [vmem:[#allocation2 + $0x18] sm:$0xff] %vm290_vm2, %v267_v3  ;;  %416 = vst.msk [vmem:[#allocation3 + $0x18] sm:$0xff] %vm290_vm2, %v390_v7 }
 0x16c   :  { %293 = vst.msk [vmem:[#allocation2 + $0x10] sm:$0xff] %vm290_vm2, %v262_v6  ;;  %v3206_v10 = vpop.f32.mrb[4].mxu0  ;;  %415 = vst.msk [vmem:[#allocation3 + $0x10] sm:$0xff] %vm290_vm2, %v385_v9  ;;  %v3222_v15 = vpop.f32.mrb[4].mxu1 }
 0x16d   :  { %v277_v11 = vadd.f32 %v3206_v10, %v2837_v56  ;;  %v271_v12 = vpop.f32.mrb[5].mxu0  ;;  %v400_v17 = vadd.f32 %v3222_v15, %v2846_v57  ;;  %v394_v18 = vpop.f32.mrb[5].mxu1 }
 0x16e   :  { %v272_v16 = vadd.f32 %v2837_v56, %v271_v12  ;;  %v395_v20 = vadd.f32 %v2846_v57, %v394_v18 }
 0x16f   :  { %296 = vst.msk [vmem:[#allocation2 + $0x28] sm:$0xff] %vm290_vm2, %v277_v11  ;;  %418 = vst.msk [vmem:[#allocation3 + $0x28] sm:$0xff] %vm290_vm2, %v400_v17  ;;  %v788_v38 = vld [vmem:[#allocation2] sm:$0xff] }
 0x170   :  { %295 = vst.msk [vmem:[#allocation2 + $0x20] sm:$0xff] %vm290_vm2, %v272_v16  ;;  %v3209_v21 = vpop.f32.mrb[6].mxu0  ;;  %417 = vst.msk [vmem:[#allocation3 + $0x20] sm:$0xff] %vm290_vm2, %v395_v20  ;;  %v3225_v25 = vpop.f32.mrb[6].mxu1  ;;  %v796_v1 = vld [vmem:[#allocation3] sm:$0xff] }
 0x171   :  { %v287_v22 = vadd.f32 %v3209_v21, %v2837_v56  ;;  %v281_v23 = vpop.f32.mrb[7].mxu0  ;;  %v410_v27 = vadd.f32 %v3225_v25, %v2846_v57  ;;  %v404_v28 = vpop.f32.mrb[7].mxu1 }
 0x172   :  { %v282_v26 = vadd.f32 %v2837_v56, %v281_v23  ;;  %v405_v31 = vadd.f32 %v2846_v57, %v404_v28 }
 0x173   :  { %298 = vst.msk [vmem:[#allocation2 + $0x38] sm:$0xff] %vm290_vm2, %v287_v22  ;;  %420 = vst.msk [vmem:[#allocation3 + $0x38] sm:$0xff] %vm290_vm2, %v410_v27 }
 0x174   :  { %297 = vst.msk [vmem:[#allocation2 + $0x30] sm:$0xff] %vm290_vm2, %v282_v26  ;;  %v3232_v32 = vpop.f32.mrb[8].mxu0  ;;  %419 = vst.msk [vmem:[#allocation3 + $0x30] sm:$0xff] %vm290_vm2, %v405_v31  ;;  %v638_v37 = vpop.f32.mrb[8].mxu1  ;;  %v1027_v26 = vld [vmem:[#allocation2 + $0x8] sm:$0xff] }
 0x175   :  { %v502_v33 = vadd.f32 %v3232_v32, %v2855_v30  ;;  %v496_v40 = vpop.f32.mrb[9].mxu0  ;;  %v789_v41 = vadd.f32 %v788_v38, %v638_v37  ;;  %v3260_v44 = vpop.f32.mrb[9].mxu1 }
 0x176   :  { %v497_v43 = vadd.f32 %v2855_v30, %v496_v40 }
 0x177   :  { %536 = vst.msk [vmem:[#allocation4 + $0x8] sm:$0xff] %vm290_vm2, %v502_v33  ;;  %v2868_v46 = vmul.f32 -1.442695, %v789_v41  ;;  %v1036_v33 = vld [vmem:[#allocation3 + $0x8] sm:$0xff] }
 0x178   :  { %535 = vst.msk [vmem:[#allocation4] sm:$0xff] %vm290_vm2, %v497_v43  ;;  %v3235_v47 = vpop.f32.mrb[10].mxu0 }
 0x179   :  { %v512_v49 = vadd.f32 %v3235_v47, %v2855_v30  ;;  %v506_v50 = vpop.f32.mrb[11].mxu0  ;;  %4069 = vpow2.f32 %v2868_v46 }
 0x17a   :  { %v507_v52 = vadd.f32 %v2855_v30, %v506_v50 }
 0x17b   :  { %538 = vst.msk [vmem:[#allocation4 + $0x18] sm:$0xff] %vm290_vm2, %v512_v49 }
 0x17c   :  { %537 = vst.msk [vmem:[#allocation4 + $0x10] sm:$0xff] %vm290_vm2, %v507_v52  ;;  %v3238_v53 = vpop.f32.mrb[12].mxu0 }
 0x17d   :  { %v522_v56 = vadd.f32 %v3238_v53, %v2855_v30  ;;  %v516_v57 = vpop.f32.mrb[13].mxu0 }
 0x17e   :  { %v517_v58 = vadd.f32 %v2855_v30, %v516_v57  ;;  %v1045_v53 = vld [vmem:[#allocation4 + $0x8] sm:$0xff] }
 0x17f   :  { %540 = vst.msk [vmem:[#allocation4 + $0x28] sm:$0xff] %vm290_vm2, %v522_v56  ;;  %v804_v15 = vld [vmem:[#allocation4] sm:$0xff] }
 0x180   :  { %539 = vst.msk [vmem:[#allocation4 + $0x20] sm:$0xff] %vm290_vm2, %v517_v58  ;;  %v3241_v59 = vpop.f32.mrb[14].mxu0 }
 0x181   :  { %v532_v60 = vadd.f32 %v3241_v59, %v2855_v30  ;;  %v526_v61 = vpop.f32.mrb[15].mxu0 }
 0x182   :  { %v527_v62 = vadd.f32 %v2855_v30, %v526_v61 }
 0x183   :  { %542 = vst.msk [vmem:[#allocation4 + $0x38] sm:$0xff] %vm290_vm2, %v532_v60  ;;  %v4070_v63 = vpop.eup %4069 }
 0x184   :  { %541 = vst.msk [vmem:[#allocation4 + $0x30] sm:$0xff] %vm290_vm2, %v527_v62  ;;  %v708_v0 = vpop.f32.mrb[16].mxu0  ;;  %v793_v2 = vadd.f32 1.0, %v4070_v63 }
 0x185   :  { %v797_v3 = vadd.f32 %v796_v1, %v708_v0  ;;  %v3279_v4 = vpop.f32.mrb[17].mxu0  ;;  %v1269_v0 = vld [vmem:[#allocation2 + $0x10] sm:$0xff] }
 0x186   :  { %v784_v5 = vpop.f32.mrb[10].mxu1  ;;  %4071 = vrcp.f32 %v793_v2 }
 0x187   :  { %v2869_v6 = vmul.f32 -1.442695, %v797_v3  ;;  %v3298_v7 = vpop.f32.mrb[11].mxu1  ;;  %v785_v9 = vadd.f32 %v4762_v8, %v784_v5 }
 0x189   :  { %4073 = vpow2.f32 %v2869_v6  ;;  %v1278_v6 = vld [vmem:[#allocation3 + $0x10] sm:$0xff] }
 0x190   :  { %v4072_v10 = vpop.eup %4071 }
 0x191   :  { %v805_v11 = vmul.f32 %v4072_v10, %v785_v9 }
 0x193   :  { %v4074_v12 = vpop.eup %4073  ;;  %v806_v17 = vadd.f32 %v805_v11, %v804_v15 }
 0x194   :  { %v801_v16 = vadd.f32 1.0, %v4074_v12 }
 0x196   :  { %4075 = vrcp.f32 %v801_v16 }
 0x197   :  { %4077 = vtanh.f32 %v806_v17 }
 0x1a0   :  { %v4076_v18 = vpop.eup %4075 }
 0x1a1   :  { %v808_v20 = vsub.f32 1.0, %v4076_v18  ;;  %v4078_v21 = vpop.eup %4077  ;;  %v810_v23 = vmul.f32 %v4076_v18, %v4629_v36 }
 0x1a3   :  { %v809_v22 = vmul.f32 %v4078_v21, %v808_v20 }
 0x1a5   :  { %v811_v25 = vadd.f32 %v810_v23, %v809_v22  ;;  %v1287_v22 = vld [vmem:[#allocation4 + $0x10] sm:$0xff] }
 0x1a7   :  { %812 = vst.msk [vmem:[#allocation5] sm:$0xff] %vm290_vm2, %v811_v25  ;;  %3316 = vmatmul.mubr.msk.f32.vlgmr.msra.gmra.mrb[18].mxu0 %vm290_vm2, %v811_v25  ;;  %3335 = vmatmul.mubr.msk.f32.vlgmr.msra.gmra.mrb[12].mxu1 %vm290_vm2, %v811_v25 }
 0x1a8   :  { %3814 = vmatpush3.bf16.msra.mxu0 %v4638_v39  ;;  %3353 = vmatprep.mubr.msk.f32.mxu0 %vm4345_vm1, %v4346_v35 }
 0x1a9   :  { %3815 = vmatprep.subr.bf16.mxu0 %v4344_v14  ;;  %3826 = vmatpush3.bf16.msra.mxu1 %v4545_v13 }
 0x1aa   :  { %3827 = vmatprep.subr.bf16.mxu1 %v4344_v14  ;;  %3372 = vmatprep.mubr.msk.f32.mxu1 %vm4345_vm1, %v4346_v35 }
 0x1ac   :  { %3817 = vmatpush3.bf16.msra.mxu0 %v4661_v45 }
 0x1ad   :  { %3818 = vmatprep.subr.bf16.mxu0 %v4344_v14  ;;  %3829 = vmatpush3.bf16.msra.mxu1 %v4564_v19 }
 0x1ae   :  { %3830 = vmatprep.subr.bf16.mxu1 %v4344_v14 }
 0x1b0   :  { %3820 = vmatpush3.bf16.msra.mxu0 %v4685_v51 }
 0x1b1   :  { %3821 = vmatprep.subr.bf16.mxu0 %v4344_v14  ;;  %3832 = vmatpush3.bf16.msra.mxu1 %v4586_v24 }
 0x1b2   :  { %3833 = vmatprep.subr.bf16.mxu1 %v4344_v14 }
 0x1b4   :  { %3823 = vmatpush3.bf16.msra.mxu0 %v4701_v55 }
 0x1b5   :  { %3836 = vmatprep.subr.bf16.mxu0 %v4344_v14  ;;  %3835 = vmatpush3.bf16.msra.mxu1 %v4606_v29 }
 0x1b6   :  { %3848 = vmatprep.subr.bf16.mxu1 %v4344_v14 }
 0x1b7   :  { %3354 = vmatmul.mubr.msk.f32.vlgmr.msra.gmra.mrb[20].mxu0 %vm290_vm2, %v811_v25 }
 0x1b8   :  { %3838 = vmatpush3.bf16.msra.mxu0 %v4624_v34  ;;  %3391 = vmatprep.mubr.msk.f32.mxu0 %vm4345_vm1, %v4346_v35 }
 0x1b9   :  { %3839 = vmatprep.subr.bf16.mxu0 %v4344_v14 }
 0x1bc   :  { %3841 = vmatpush3.bf16.msra.mxu0 %v4650_v42 }
 0x1bd   :  { %3842 = vmatprep.subr.bf16.mxu0 %v4344_v14 }
 0x1c0   :  { %3844 = vmatpush3.bf16.msra.mxu0 %v4675_v48 }
 0x1c1   :  { %3845 = vmatprep.subr.bf16.mxu0 %v4344_v14 }
 0x1c4   :  { %3847 = vmatpush3.bf16.msra.mxu0 %v4697_v54 }
 0x1c5   :  { %3860 = vmatprep.subr.bf16.mxu0 %v4344_v14 }
 0x27a   :  { %v882_v36 = vpop.f32.mrb[18].mxu0  ;;  %v952_v27 = vpop.f32.mrb[12].mxu1 }
 0x27b   :  { %v1028_v28 = vadd.f32 %v1027_v26, %v882_v36  ;;  %v3317_v30 = vpop.f32.mrb[19].mxu0  ;;  %v3336_v31 = vpop.f32.mrb[13].mxu1  ;;  %v1037_v37 = vadd.f32 %v1036_v33, %v952_v27 }
 0x27d   :  { %v2873_v32 = vmul.f32 -1.442695, %v1028_v28  ;;  %v2874_v38 = vmul.f32 -1.442695, %v1037_v37 }
 0x27f   :  { %4079 = vpow2.f32 %v2873_v32  ;;  %v1511_v32 = vld [vmem:[#allocation2 + $0x18] sm:$0xff] }
 0x280   :  { %4081 = vpow2.f32 %v2874_v38 }
 0x289   :  { %v4080_v40 = vpop.eup %4079 }
 0x28a   :  { %v1032_v41 = vadd.f32 1.0, %v4080_v40  ;;  %v1022_v43 = vpop.f32.mrb[20].mxu0  ;;  %v4082_v46 = vpop.eup %4081 }
 0x28b   :  { %v3355_v44 = vpop.f32.mrb[21].mxu0  ;;  %v1041_v47 = vadd.f32 1.0, %v4082_v46  ;;  %v1023_v49 = vadd.f32 %v4762_v8, %v1022_v43  ;;  %v1520_v43 = vld [vmem:[#allocation3 + $0x18] sm:$0xff] }
 0x28c   :  { %4083 = vrcp.f32 %v1032_v41 }
 0x28d   :  { %4085 = vrcp.f32 %v1041_v47 }
 0x296   :  { %v4084_v50 = vpop.eup %4083 }
 0x297   :  { %v1046_v52 = vmul.f32 %v4084_v50, %v1023_v49  ;;  %v4086_v57 = vpop.eup %4085 }
 0x298   :  { %v1049_v58 = vsub.f32 1.0, %v4086_v57  ;;  %v1051_v61 = vmul.f32 %v4086_v57, %v811_v25 }
 0x299   :  { %v1047_v56 = vadd.f32 %v1046_v52, %v1045_v53 }
 0x29b   :  { %4087 = vtanh.f32 %v1047_v56 }
 0x2a5   :  { %v4088_v59 = vpop.eup %4087 }
 0x2a6   :  { %v1050_v60 = vmul.f32 %v4088_v59, %v1049_v58 }
 0x2a8   :  { %v1052_v62 = vadd.f32 %v1051_v61, %v1050_v60  ;;  %v1529_v60 = vld [vmem:[#allocation4 + $0x18] sm:$0xff] }
 0x2aa   :  { %1054 = vst.msk [vmem:[#allocation5 + $0x8] sm:$0xff] %vm290_vm2, %v1052_v62  ;;  %3373 = vmatmul.mubr.msk.f32.vlgmr.msra.gmra.mrb[14].mxu1 %vm290_vm2, %v1052_v62  ;;  %3392 = vmatmul.mubr.msk.f32.vlgmr.msra.gmra.mrb[22].mxu0 %vm290_vm2, %v1052_v62 }
 0x2ab   :  { %3850 = vmatpush3.bf16.msra.mxu1 %v4638_v39  ;;  %3410 = vmatprep.mubr.msk.f32.mxu1 %vm4345_vm1, %v4346_v35 }
 0x2ac   :  { %3851 = vmatprep.subr.bf16.mxu1 %v4344_v14  ;;  %3862 = vmatpush3.bf16.msra.mxu0 %v4545_v13 }
 0x2ad   :  { %3863 = vmatprep.subr.bf16.mxu0 %v4344_v14  ;;  %3429 = vmatprep.mubr.msk.f32.mxu0 %vm4345_vm1, %v4346_v35 }
 0x2af   :  { %3853 = vmatpush3.bf16.msra.mxu1 %v4661_v45 }
 0x2b0   :  { %3854 = vmatprep.subr.bf16.mxu1 %v4344_v14  ;;  %3865 = vmatpush3.bf16.msra.mxu0 %v4564_v19 }
 0x2b1   :  { %3866 = vmatprep.subr.bf16.mxu0 %v4344_v14 }
 0x2b3   :  { %3856 = vmatpush3.bf16.msra.mxu1 %v4685_v51 }
 0x2b4   :  { %3857 = vmatprep.subr.bf16.mxu1 %v4344_v14  ;;  %3868 = vmatpush3.bf16.msra.mxu0 %v4586_v24 }
 0x2b5   :  { %3869 = vmatprep.subr.bf16.mxu0 %v4344_v14 }
 0x2b7   :  { %3859 = vmatpush3.bf16.msra.mxu1 %v4701_v55 }
 0x2b8   :  { %3872 = vmatprep.subr.bf16.mxu1 %v4344_v14  ;;  %3871 = vmatpush3.bf16.msra.mxu0 %v4606_v29 }
 0x2b9   :  { %3884 = vmatprep.subr.bf16.mxu0 %v4344_v14 }
 0x2ba   :  { %3411 = vmatmul.mubr.msk.f32.vlgmr.msra.gmra.mrb[16].mxu1 %vm290_vm2, %v1052_v62 }
 0x2bb   :  { %3874 = vmatpush3.bf16.msra.mxu1 %v4624_v34  ;;  %3448 = vmatprep.mubr.msk.f32.mxu1 %vm4345_vm1, %v4346_v35 }
 0x2bc   :  { %3875 = vmatprep.subr.bf16.mxu1 %v4344_v14 }
 0x2bf   :  { %3877 = vmatpush3.bf16.msra.mxu1 %v4650_v42 }
 0x2c0   :  { %3878 = vmatprep.subr.bf16.mxu1 %v4344_v14 }
 0x2c3   :  { %3880 = vmatpush3.bf16.msra.mxu1 %v4675_v48 }
 0x2c4   :  { %3881 = vmatprep.subr.bf16.mxu1 %v4344_v14 }
 0x2c7   :  { %3883 = vmatpush3.bf16.msra.mxu1 %v4697_v54 }
 0x2c8   :  { %3896 = vmatprep.subr.bf16.mxu1 %v4344_v14 }
 0x37d   :  { %v1124_v63 = vpop.f32.mrb[14].mxu1  ;;  %v1194_v1 = vpop.f32.mrb[22].mxu0 }
 0x37e   :  { %v1270_v2 = vadd.f32 %v1269_v0, %v1124_v63  ;;  %v3374_v3 = vpop.f32.mrb[15].mxu1  ;;  %v3393_v4 = vpop.f32.mrb[23].mxu0  ;;  %v1279_v7 = vadd.f32 %v1278_v6, %v1194_v1 }
 0x380   :  { %v2878_v5 = vmul.f32 -1.442695, %v1270_v2  ;;  %v2879_v9 = vmul.f32 -1.442695, %v1279_v7 }
 0x382   :  { %4089 = vpow2.f32 %v2878_v5  ;;  %v1753_v5 = vld [vmem:[#allocation2 + $0x20] sm:$0xff] }
 0x383   :  { %4091 = vpow2.f32 %v2879_v9 }
 0x38c   :  { %v4090_v10 = vpop.eup %4089 }
 0x38d   :  { %v1274_v11 = vadd.f32 1.0, %v4090_v10  ;;  %v1264_v12 = vpop.f32.mrb[16].mxu1  ;;  %v4092_v16 = vpop.eup %4091 }
 0x38e   :  { %v3412_v15 = vpop.f32.mrb[17].mxu1  ;;  %v1283_v17 = vadd.f32 1.0, %v4092_v16  ;;  %v1265_v18 = vadd.f32 %v4762_v8, %v1264_v12  ;;  %v1762_v12 = vld [vmem:[#allocation3 + $0x20] sm:$0xff] }
 0x38f   :  { %4093 = vrcp.f32 %v1274_v11 }
 0x390   :  { %4095 = vrcp.f32 %v1283_v17 }
 0x399   :  { %v4094_v20 = vpop.eup %4093 }
 0x39a   :  { %v1288_v21 = vmul.f32 %v4094_v20, %v1265_v18  ;;  %v4096_v25 = vpop.eup %4095 }
 0x39b   :  { %v1291_v36 = vsub.f32 1.0, %v4096_v25  ;;  %v1293_v28 = vmul.f32 %v4096_v25, %v1052_v62 }
 0x39c   :  { %v1289_v23 = vadd.f32 %v1288_v21, %v1287_v22 }
 0x39e   :  { %4097 = vtanh.f32 %v1289_v23 }
 0x3a8   :  { %v4098_v26 = vpop.eup %4097 }
 0x3a9   :  { %v1292_v27 = vmul.f32 %v4098_v26, %v1291_v36 }
 0x3ab   :  { %v1294_v30 = vadd.f32 %v1293_v28, %v1292_v27  ;;  %v1771_v27 = vld [vmem:[#allocation4 + $0x20] sm:$0xff] }
 0x3ad   :  { %1296 = vst.msk [vmem:[#allocation5 + $0x10] sm:$0xff] %vm290_vm2, %v1294_v30  ;;  %3430 = vmatmul.mubr.msk.f32.vlgmr.msra.gmra.mrb[24].mxu0 %vm290_vm2, %v1294_v30  ;;  %3449 = vmatmul.mubr.msk.f32.vlgmr.msra.gmra.mrb[18].mxu1 %vm290_vm2, %v1294_v30 }
 0x3ae   :  { %3886 = vmatpush3.bf16.msra.mxu0 %v4638_v39  ;;  %3467 = vmatprep.mubr.msk.f32.mxu0 %vm4345_vm1, %v4346_v35 }
 0x3af   :  { %3887 = vmatprep.subr.bf16.mxu0 %v4344_v14  ;;  %3898 = vmatpush3.bf16.msra.mxu1 %v4545_v13 }
 0x3b0   :  { %3899 = vmatprep.subr.bf16.mxu1 %v4344_v14  ;;  %3486 = vmatprep.mubr.msk.f32.mxu1 %vm4345_vm1, %v4346_v35 }
 0x3b2   :  { %3889 = vmatpush3.bf16.msra.mxu0 %v4661_v45 }
 0x3b3   :  { %3890 = vmatprep.subr.bf16.mxu0 %v4344_v14  ;;  %3901 = vmatpush3.bf16.msra.mxu1 %v4564_v19 }
 0x3b4   :  { %3902 = vmatprep.subr.bf16.mxu1 %v4344_v14 }
 0x3b6   :  { %3892 = vmatpush3.bf16.msra.mxu0 %v4685_v51 }
 0x3b7   :  { %3893 = vmatprep.subr.bf16.mxu0 %v4344_v14  ;;  %3904 = vmatpush3.bf16.msra.mxu1 %v4586_v24 }
 0x3b8   :  { %3905 = vmatprep.subr.bf16.mxu1 %v4344_v14 }
 0x3ba   :  { %3895 = vmatpush3.bf16.msra.mxu0 %v4701_v55 }
 0x3bb   :  { %3908 = vmatprep.subr.bf16.mxu0 %v4344_v14  ;;  %3907 = vmatpush3.bf16.msra.mxu1 %v4606_v29 }
 0x3bc   :  { %3920 = vmatprep.subr.bf16.mxu1 %v4344_v14 }
 0x3bd   :  { %3468 = vmatmul.mubr.msk.f32.vlgmr.msra.gmra.mrb[26].mxu0 %vm290_vm2, %v1294_v30 }
 0x3be   :  { %3910 = vmatpush3.bf16.msra.mxu0 %v4624_v34  ;;  %3505 = vmatprep.mubr.msk.f32.mxu0 %vm4345_vm1, %v4346_v35 }
 0x3bf   :  { %3911 = vmatprep.subr.bf16.mxu0 %v4344_v14 }
 0x3c2   :  { %3913 = vmatpush3.bf16.msra.mxu0 %v4650_v42 }
 0x3c3   :  { %3914 = vmatprep.subr.bf16.mxu0 %v4344_v14 }
 0x3c6   :  { %3916 = vmatpush3.bf16.msra.mxu0 %v4675_v48 }
 0x3c7   :  { %3917 = vmatprep.subr.bf16.mxu0 %v4344_v14 }
 0x3ca   :  { %3919 = vmatpush3.bf16.msra.mxu0 %v4697_v54 }
 0x3cb   :  { %3932 = vmatprep.subr.bf16.mxu0 %v4344_v14 }
 0x480   :  { %v1366_v31 = vpop.f32.mrb[24].mxu0  ;;  %v1436_v33 = vpop.f32.mrb[18].mxu1 }
 0x481   :  { %v1512_v37 = vadd.f32 %v1511_v32, %v1366_v31  ;;  %v3431_v38 = vpop.f32.mrb[25].mxu0  ;;  %v3450_v40 = vpop.f32.mrb[19].mxu1  ;;  %v1521_v44 = vadd.f32 %v1520_v43, %v1436_v33 }
 0x483   :  { %v2883_v41 = vmul.f32 -1.442695, %v1512_v37  ;;  %v2884_v46 = vmul.f32 -1.442695, %v1521_v44 }
 0x485   :  { %4099 = vpow2.f32 %v2883_v41  ;;  %v1995_v41 = vld [vmem:[#allocation2 + $0x28] sm:$0xff] }
 0x486   :  { %4101 = vpow2.f32 %v2884_v46 }
 0x48f   :  { %v4100_v47 = vpop.eup %4099 }
 0x490   :  { %v1516_v49 = vadd.f32 1.0, %v4100_v47  ;;  %v1506_v50 = vpop.f32.mrb[26].mxu0  ;;  %v4102_v53 = vpop.eup %4101 }
 0x491   :  { %v3469_v52 = vpop.f32.mrb[27].mxu0  ;;  %v1525_v56 = vadd.f32 1.0, %v4102_v53  ;;  %v1507_v57 = vadd.f32 %v4762_v8, %v1506_v50  ;;  %v2004_v50 = vld [vmem:[#allocation3 + $0x28] sm:$0xff] }
 0x492   :  { %4103 = vrcp.f32 %v1516_v49 }
 0x493   :  { %4105 = vrcp.f32 %v1525_v56 }
 0x49c   :  { %v4104_v58 = vpop.eup %4103 }
 0x49d   :  { %v1530_v59 = vmul.f32 %v4104_v58, %v1507_v57  ;;  %v4106_v62 = vpop.eup %4105 }
 0x49e   :  { %v1533_v63 = vsub.f32 1.0, %v4106_v62  ;;  %v1535_v2 = vmul.f32 %v4106_v62, %v1294_v30 }
 0x49f   :  { %v1531_v61 = vadd.f32 %v1530_v59, %v1529_v60 }
 0x4a1   :  { %4107 = vtanh.f32 %v1531_v61 }
 0x4ab   :  { %v4108_v0 = vpop.eup %4107 }
 0x4ac   :  { %v1534_v1 = vmul.f32 %v4108_v0, %v1533_v63 }
 0x4ae   :  { %v1536_v3 = vadd.f32 %v1535_v2, %v1534_v1  ;;  %v2013_v1 = vld [vmem:[#allocation4 + $0x28] sm:$0xff] }
 0x4b0   :  { %1538 = vst.msk [vmem:[#allocation5 + $0x18] sm:$0xff] %vm290_vm2, %v1536_v3  ;;  %3487 = vmatmul.mubr.msk.f32.vlgmr.msra.gmra.mrb[20].mxu1 %vm290_vm2, %v1536_v3  ;;  %3506 = vmatmul.mubr.msk.f32.vlgmr.msra.gmra.mrb[28].mxu0 %vm290_vm2, %v1536_v3 }
 0x4b1   :  { %3922 = vmatpush3.bf16.msra.mxu1 %v4638_v39  ;;  %3524 = vmatprep.mubr.msk.f32.mxu1 %vm4345_vm1, %v4346_v35 }
 0x4b2   :  { %3923 = vmatprep.subr.bf16.mxu1 %v4344_v14  ;;  %3934 = vmatpush3.bf16.msra.mxu0 %v4545_v13 }
 0x4b3   :  { %3935 = vmatprep.subr.bf16.mxu0 %v4344_v14  ;;  %3543 = vmatprep.mubr.msk.f32.mxu0 %vm4345_vm1, %v4346_v35 }
 0x4b5   :  { %3925 = vmatpush3.bf16.msra.mxu1 %v4661_v45 }
 0x4b6   :  { %3926 = vmatprep.subr.bf16.mxu1 %v4344_v14  ;;  %3937 = vmatpush3.bf16.msra.mxu0 %v4564_v19 }
 0x4b7   :  { %3938 = vmatprep.subr.bf16.mxu0 %v4344_v14 }
 0x4b9   :  { %3928 = vmatpush3.bf16.msra.mxu1 %v4685_v51 }
 0x4ba   :  { %3929 = vmatprep.subr.bf16.mxu1 %v4344_v14  ;;  %3940 = vmatpush3.bf16.msra.mxu0 %v4586_v24 }
 0x4bb   :  { %3941 = vmatprep.subr.bf16.mxu0 %v4344_v14 }
 0x4bd   :  { %3931 = vmatpush3.bf16.msra.mxu1 %v4701_v55 }
 0x4be   :  { %3944 = vmatprep.subr.bf16.mxu1 %v4344_v14  ;;  %3943 = vmatpush3.bf16.msra.mxu0 %v4606_v29 }
 0x4bf   :  { %3956 = vmatprep.subr.bf16.mxu0 %v4344_v14 }
 0x4c0   :  { %3525 = vmatmul.mubr.msk.f32.vlgmr.msra.gmra.mrb[22].mxu1 %vm290_vm2, %v1536_v3 }
 0x4c1   :  { %3946 = vmatpush3.bf16.msra.mxu1 %v4624_v34  ;;  %3562 = vmatprep.mubr.msk.f32.mxu1 %vm4345_vm1, %v4346_v35 }
 0x4c2   :  { %3947 = vmatprep.subr.bf16.mxu1 %v4344_v14 }
 0x4c5   :  { %3949 = vmatpush3.bf16.msra.mxu1 %v4650_v42 }
 0x4c6   :  { %3950 = vmatprep.subr.bf16.mxu1 %v4344_v14 }
 0x4c9   :  { %3952 = vmatpush3.bf16.msra.mxu1 %v4675_v48 }
 0x4ca   :  { %3953 = vmatprep.subr.bf16.mxu1 %v4344_v14 }
 0x4cd   :  { %3955 = vmatpush3.bf16.msra.mxu1 %v4697_v54 }
 0x4ce   :  { %3968 = vmatprep.subr.bf16.mxu1 %v4344_v14 }
 0x583   :  { %v1608_v4 = vpop.f32.mrb[20].mxu1  ;;  %v1678_v6 = vpop.f32.mrb[28].mxu0 }
 0x584   :  { %v1754_v7 = vadd.f32 %v1753_v5, %v1608_v4  ;;  %v3488_v9 = vpop.f32.mrb[21].mxu1  ;;  %v3507_v10 = vpop.f32.mrb[29].mxu0  ;;  %v1763_v15 = vadd.f32 %v1762_v12, %v1678_v6 }
 0x586   :  { %v2888_v11 = vmul.f32 -1.442695, %v1754_v7  ;;  %v2889_v16 = vmul.f32 -1.442695, %v1763_v15  ;;  %v2246_v15 = vld [vmem:[#allocation3 + $0x30] sm:$0xff] }
 0x588   :  { %4109 = vpow2.f32 %v2888_v11 }
 0x589   :  { %4111 = vpow2.f32 %v2889_v16 }
 0x592   :  { %v4110_v17 = vpop.eup %4109 }
 0x593   :  { %v1758_v18 = vadd.f32 1.0, %v4110_v17  ;;  %v1748_v20 = vpop.f32.mrb[22].mxu1  ;;  %v4112_v22 = vpop.eup %4111 }
 0x594   :  { %v3526_v21 = vpop.f32.mrb[23].mxu1  ;;  %v1767_v23 = vadd.f32 1.0, %v4112_v22  ;;  %v1749_v25 = vadd.f32 %v4762_v8, %v1748_v20 }
 0x595   :  { %4113 = vrcp.f32 %v1758_v18 }
 0x596   :  { %4115 = vrcp.f32 %v1767_v23 }
 0x59f   :  { %v4114_v36 = vpop.eup %4113 }
 0x5a0   :  { %v1772_v26 = vmul.f32 %v4114_v36, %v1749_v25  ;;  %v4116_v30 = vpop.eup %4115 }
 0x5a1   :  { %v1775_v31 = vsub.f32 1.0, %v4116_v30  ;;  %v1777_v37 = vmul.f32 %v4116_v30, %v1536_v3 }
 0x5a2   :  { %v1773_v28 = vadd.f32 %v1772_v26, %v1771_v27  ;;  %v2255_v27 = vld [vmem:[#allocation4 + $0x30] sm:$0xff] }
 0x5a4   :  { %4117 = vtanh.f32 %v1773_v28 }
 0x5ae   :  { %v4118_v32 = vpop.eup %4117 }
 0x5af   :  { %v1776_v33 = vmul.f32 %v4118_v32, %v1775_v31 }
 0x5b1   :  { %v1778_v38 = vadd.f32 %v1777_v37, %v1776_v33 }
 0x5b3   :  { %1780 = vst.msk [vmem:[#allocation5 + $0x20] sm:$0xff] %vm290_vm2, %v1778_v38  ;;  %3544 = vmatmul.mubr.msk.f32.vlgmr.msra.gmra.mrb[30].mxu0 %vm290_vm2, %v1778_v38  ;;  %3563 = vmatmul.mubr.msk.f32.vlgmr.msra.gmra.mrb[24].mxu1 %vm290_vm2, %v1778_v38 }
 0x5b4   :  { %3958 = vmatpush3.bf16.msra.mxu0 %v4638_v39  ;;  %3581 = vmatprep.mubr.msk.f32.mxu0 %vm4345_vm1, %v4346_v35 }
 0x5b5   :  { %3959 = vmatprep.subr.bf16.mxu0 %v4344_v14  ;;  %3970 = vmatpush3.bf16.msra.mxu1 %v4545_v13 }
 0x5b6   :  { %3971 = vmatprep.subr.bf16.mxu1 %v4344_v14  ;;  %3600 = vmatprep.mubr.msk.f32.mxu1 %vm4345_vm1, %v4346_v35 }
 0x5b8   :  { %3961 = vmatpush3.bf16.msra.mxu0 %v4661_v45 }
 0x5b9   :  { %3962 = vmatprep.subr.bf16.mxu0 %v4344_v14  ;;  %3973 = vmatpush3.bf16.msra.mxu1 %v4564_v19 }
 0x5ba   :  { %3974 = vmatprep.subr.bf16.mxu1 %v4344_v14 }
 0x5bc   :  { %3964 = vmatpush3.bf16.msra.mxu0 %v4685_v51 }
 0x5bd   :  { %3965 = vmatprep.subr.bf16.mxu0 %v4344_v14  ;;  %3976 = vmatpush3.bf16.msra.mxu1 %v4586_v24 }
 0x5be   :  { %3977 = vmatprep.subr.bf16.mxu1 %v4344_v14 }
 0x5c0   :  { %3967 = vmatpush3.bf16.msra.mxu0 %v4701_v55 }
 0x5c1   :  { %3980 = vmatprep.subr.bf16.mxu0 %v4344_v14  ;;  %3979 = vmatpush3.bf16.msra.mxu1 %v4606_v29 }
 0x5c2   :  { %3992 = vmatprep.subr.bf16.mxu1 %v4344_v14 }
 0x5c3   :  { %3582 = vmatmul.mubr.msk.f32.vlgmr.msra.gmra.mrb[32].mxu0 %vm290_vm2, %v1778_v38 }
 0x5c4   :  { %3982 = vmatpush3.bf16.msra.mxu0 %v4624_v34  ;;  %3619 = vmatprep.mubr.msk.f32.mxu0 %vm4345_vm1, %v4346_v35 }
 0x5c5   :  { %3983 = vmatprep.subr.bf16.mxu0 %v4344_v14 }
 0x5c8   :  { %3985 = vmatpush3.bf16.msra.mxu0 %v4650_v42 }
 0x5c9   :  { %3986 = vmatprep.subr.bf16.mxu0 %v4344_v14 }
 0x5cc   :  { %3988 = vmatpush3.bf16.msra.mxu0 %v4675_v48 }
 0x5cd   :  { %3989 = vmatprep.subr.bf16.mxu0 %v4344_v14 }
 0x5d0   :  { %3991 = vmatpush3.bf16.msra.mxu0 %v4697_v54 }
 0x5d1   :  { %4004 = vmatprep.subr.bf16.mxu0 %v4344_v14 }
 0x686   :  { %v1850_v40 = vpop.f32.mrb[30].mxu0  ;;  %v1920_v43 = vpop.f32.mrb[24].mxu1 }
 0x687   :  { %v1996_v44 = vadd.f32 %v1995_v41, %v1850_v40  ;;  %v3545_v46 = vpop.f32.mrb[31].mxu0  ;;  %v3564_v47 = vpop.f32.mrb[25].mxu1  ;;  %v2005_v52 = vadd.f32 %v2004_v50, %v1920_v43  ;;  %v2519_v40 = vld [vmem:[%s5120_s12 + $0x18] sm:$0xff]  ;;  %v2522_v50 = vld [vmem:[%s5120_s12 + $0x30] sm:$0xff] }
 0x688   :  { %v2521_v46 = vld [vmem:[%s5120_s12 + $0x28] sm:$0xff]  ;;  %v2508_v47 = vld [vmem:[#allocation5] sm:$0xff] }
 0x689   :  { %v2893_v49 = vmul.f32 -1.442695, %v1996_v44  ;;  %v2894_v53 = vmul.f32 -1.442695, %v2005_v52  ;;  %v2520_v44 = vld [vmem:[%s5120_s12 + $0x20] sm:$0xff]  ;;  %v2523_v52 = vld [vmem:[%s5120_s12 + $0x38] sm:$0xff] }
 0x68b   :  { %4119 = vpow2.f32 %v2893_v49  ;;  %v4048_v49 = vpack.c.bf16 %v2521_v46, %v2520_v44 }
 0x68c   :  { %4121 = vpow2.f32 %v2894_v53  ;;  %v2509_v53 = vld [vmem:[#allocation5 + $0x8] sm:$0xff] }
 0x695   :  { %v4120_v56 = vpop.eup %4119 }
 0x696   :  { %v2000_v57 = vadd.f32 1.0, %v4120_v56  ;;  %v1990_v58 = vpop.f32.mrb[32].mxu0  ;;  %v4122_v60 = vpop.eup %4121  ;;  %v2668_v56 = vld [vmem:[%s5122_s14] sm:$0xff] }
 0x697   :  { %v3583_v59 = vpop.f32.mrb[33].mxu0  ;;  %v2009_v61 = vadd.f32 1.0, %v4122_v60  ;;  %v1991_v62 = vadd.f32 %v4762_v8, %v1990_v58  ;;  %v2479_v58 = vld [vmem:[#allocation2 + $0x38] sm:$0xff] }
 0x698   :  { %4123 = vrcp.f32 %v2000_v57 }
 0x699   :  { %4125 = vrcp.f32 %v2009_v61 }
 0x6a2   :  { %v4124_v63 = vpop.eup %4123 }
 0x6a3   :  { %v2014_v0 = vmul.f32 %v4124_v63, %v1991_v62  ;;  %v4126_v3 = vpop.eup %4125 }
 0x6a4   :  { %v2017_v4 = vsub.f32 1.0, %v4126_v3  ;;  %v2019_v7 = vmul.f32 %v4126_v3, %v1778_v38  ;;  %v2518_v38 = vld [vmem:[%s5120_s12 + $0x10] sm:$0xff]  ;;  %v5038_v3 = vld [vmem:[%s5121_s13] ss:$0 sm:$0xff] }
 0x6a5   :  { %v2015_v2 = vadd.f32 %v2014_v0, %v2013_v1  ;;  %v4044_v43 = vpack.c.bf16 %v2519_v40, %v2518_v38  ;;  %v2488_v0 = vld [vmem:[#allocation3 + $0x38] sm:$0xff]  ;;  %v2914_v40 = vld [vmem:[%s5123_s15] ss:$0 sm:$0xff] }
 0x6a7   :  { %4127 = vtanh.f32 %v2015_v2 }
 0x6b1   :  { %v4128_v5 = vpop.eup %4127 }
 0x6b2   :  { %v2018_v6 = vmul.f32 %v4128_v5, %v2017_v4 }
 0x6b4   :  { %v4941_v9 = vadd.f32 %v2019_v7, %v2018_v6 }
 0x6b6   :  { %2022 = vst.msk [vmem:[#allocation5 + $0x28] sm:$0xff] %vm290_vm2, %v4941_v9  ;;  %3601 = vmatmul.mubr.msk.f32.vlgmr.msra.gmra.mrb[26].mxu1 %vm290_vm2, %v4941_v9  ;;  %3620 = vmatmul.mubr.msk.f32.vlgmr.msra.gmra.mrb[34].mxu0 %vm290_vm2, %v4941_v9 }
 0x6b7   :  { %3994 = vmatpush3.bf16.msra.mxu1 %v4638_v39  ;;  %3638 = vmatprep.mubr.msk.f32.mxu1 %vm4345_vm1, %v4346_v35 }
 0x6b8   :  { %3995 = vmatprep.subr.bf16.mxu1 %v4344_v14  ;;  %4006 = vmatpush3.bf16.msra.mxu0 %v4545_v13  ;;  %v2516_v13 = vld [vmem:[%s5120_s12] sm:$0xff] }
 0x6b9   :  { %4007 = vmatprep.subr.bf16.mxu0 %v4344_v14  ;;  %3657 = vmatprep.mubr.msk.f32.mxu0 %vm4345_vm1, %v4346_v35 }
 0x6bb   :  { %3997 = vmatpush3.bf16.msra.mxu1 %v4661_v45 }
 0x6bc   :  { %3998 = vmatprep.subr.bf16.mxu1 %v4344_v14  ;;  %4009 = vmatpush3.bf16.msra.mxu0 %v4564_v19  ;;  %v2517_v19 = vld [vmem:[%s5120_s12 + $0x8] sm:$0xff] }
 0x6bd   :  { %4010 = vmatprep.subr.bf16.mxu0 %v4344_v14 }
 0x6bf   :  { %4000 = vmatpush3.bf16.msra.mxu1 %v4685_v51 }
 0x6c0   :  { %4001 = vmatprep.subr.bf16.mxu1 %v4344_v14  ;;  %4012 = vmatpush3.bf16.msra.mxu0 %v4586_v24  ;;  %v4040_v24 = vpack.c.bf16 %v2517_v19, %v2516_v13 }
 0x6c1   :  { %4013 = vmatprep.subr.bf16.mxu0 %v4344_v14 }
 0x6c3   :  { %4003 = vmatpush3.bf16.msra.mxu1 %v4701_v55 }
 0x6c4   :  { %4016 = vmatprep.subr.bf16.mxu1 %v4344_v14  ;;  %4015 = vmatpush3.bf16.msra.mxu0 %v4606_v29 }
 0x6c5   :  { %4028 = vmatprep.subr.bf16.mxu0 %v4344_v14 }
 0x6c6   :  { %3639 = vmatmul.mubr.msk.f32.vlgmr.msra.gmra.mrb[28].mxu1 %vm290_vm2, %v4941_v9 }
 0x6c7   :  { %4018 = vmatpush3.bf16.msra.mxu1 %v4624_v34  ;;  %3676 = vmatprep.mubr.msk.f32.mxu1 %vm4345_vm1, %v4346_v35  ;;  %v2237_v34 = vld [vmem:[#allocation2 + $0x30] sm:$0xff] }
 0x6c8   :  { %4019 = vmatprep.subr.bf16.mxu1 %v4344_v14 }
 0x6cb   :  { %4021 = vmatpush3.bf16.msra.mxu1 %v4650_v42 }
 0x6cc   :  { %4022 = vmatprep.subr.bf16.mxu1 %v4344_v14 }
 0x6cf   :  { %4024 = vmatpush3.bf16.msra.mxu1 %v4675_v48 }
 0x6d0   :  { %4025 = vmatprep.subr.bf16.mxu1 %v4344_v14 }
 0x6d3   :  { %4027 = vmatpush3.bf16.msra.mxu1 %v4697_v54 }
 0x6d4   :  { %4041 = vmatprep.subr.bf16.mxu1 %v4040_v24 }
 0x789   :  { %v2092_v29 = vpop.f32.mrb[26].mxu1  ;;  %v2162_v42 = vpop.f32.mrb[34].mxu0 }
 0x78a   :  { %v2238_v10 = vadd.f32 %v2237_v34, %v2092_v29  ;;  %v3602_v11 = vpop.f32.mrb[27].mxu1  ;;  %v3621_v48 = vpop.f32.mrb[35].mxu0  ;;  %v2247_v16 = vadd.f32 %v2246_v15, %v2162_v42 }
 0x78c   :  { %v2898_v12 = vmul.f32 -1.442695, %v2238_v10  ;;  %v2899_v54 = vmul.f32 -1.442695, %v2247_v16 }
 0x78e   :  { %4129 = vpow2.f32 %v2898_v12 }
 0x78f   :  { %4131 = vpow2.f32 %v2899_v54 }
 0x798   :  { %v4130_v17 = vpop.eup %4129 }
 0x799   :  { %v2242_v18 = vadd.f32 1.0, %v4130_v17  ;;  %v2232_v20 = vpop.f32.mrb[28].mxu1  ;;  %v4132_v22 = vpop.eup %4131 }
 0x79a   :  { %v3640_v21 = vpop.f32.mrb[29].mxu1  ;;  %v2251_v23 = vadd.f32 1.0, %v4132_v22  ;;  %v2233_v25 = vadd.f32 %v4762_v8, %v2232_v20 }
 0x79b   :  { %4133 = vrcp.f32 %v2242_v18 }
 0x79c   :  { %4135 = vrcp.f32 %v2251_v23 }
 0x7a5   :  { %v4134_v36 = vpop.eup %4133 }
 0x7a6   :  { %v2256_v26 = vmul.f32 %v4134_v36, %v2233_v25  ;;  %v4136_v30 = vpop.eup %4135 }
 0x7a7   :  { %v2259_v31 = vsub.f32 1.0, %v4136_v30  ;;  %v2261_v37 = vmul.f32 %v4136_v30, %v4941_v9 }
 0x7a8   :  { %v2257_v28 = vadd.f32 %v2256_v26, %v2255_v27  ;;  %v2497_v27 = vld [vmem:[#allocation4 + $0x38] sm:$0xff] }
 0x7aa   :  { %4137 = vtanh.f32 %v2257_v28 }
 0x7b4   :  { %v4138_v32 = vpop.eup %4137 }
 0x7b5   :  { %v2260_v33 = vmul.f32 %v4138_v32, %v2259_v31 }
 0x7b7   :  { %v4994_v41 = vadd.f32 %v2261_v37, %v2260_v33 }
 0x7b9   :  { %2264 = vst.msk [vmem:[#allocation5 + $0x30] sm:$0xff] %vm290_vm2, %v4994_v41  ;;  %3658 = vmatmul.mubr.msk.f32.vlgmr.msra.gmra.mrb[36].mxu0 %vm290_vm2, %v4994_v41  ;;  %3677 = vmatmul.mubr.msk.f32.vlgmr.msra.gmra.mrb[30].mxu1 %vm290_vm2, %v4994_v41 }
 0x7ba   :  { %4030 = vmatpush3.bf16.msra.mxu0 %v4638_v39  ;;  %4043 = vmatpush3.bf16.msra.mxu1 %v4040_v24  ;;  %v4052_v39 = vpack.c.bf16 %v2523_v52, %v2522_v50 }
 0x7bb   :  { %3714 = vmatprep.mubr.msk.f32.mxu1 %vm290_vm2, %v2508_v47  ;;  %4031 = vmatprep.subr.bf16.mxu0 %v4344_v14 }
 0x7bc   :  { %4045 = vmatprep.subr.bf16.mxu1 %v4044_v43  ;;  %3695 = vmatprep.mubr.msk.f32.mxu0 %vm4345_vm1, %v4346_v35  ;;  %v2510_v35 = vld [vmem:[#allocation5 + $0x10] sm:$0xff] }
 0x7be   :  { %4033 = vmatpush3.bf16.msra.mxu0 %v4661_v45  ;;  %4047 = vmatpush3.bf16.msra.mxu1 %v4044_v43  ;;  %v2511_v45 = vld [vmem:[#allocation5 + $0x18] sm:$0xff] }
 0x7bf   :  { %4034 = vmatprep.subr.bf16.mxu0 %v4344_v14  ;;  %4049 = vmatprep.subr.bf16.mxu1 %v4048_v49 }
 0x7c2   :  { %4036 = vmatpush3.bf16.msra.mxu0 %v4685_v51  ;;  %4051 = vmatpush3.bf16.msra.mxu1 %v4048_v49  ;;  %v2512_v51 = vld [vmem:[#allocation5 + $0x20] sm:$0xff] }
 0x7c3   :  { %4037 = vmatprep.subr.bf16.mxu0 %v4344_v14  ;;  %4053 = vmatprep.subr.bf16.mxu1 %v4052_v39  ;;  %v2513_v14 = vld [vmem:[#allocation5 + $0x28] sm:$0xff] }
 0x7c6   :  { %4039 = vmatpush3.bf16.msra.mxu0 %v4701_v55  ;;  %4055 = vmatpush3.bf16.msra.mxu1 %v4052_v39  ;;  %v2514_v55 = vld [vmem:[#allocation5 + $0x30] sm:$0xff] }
 0x7c7   :  { %3726 = vmatprep.subr.mxu0 %v2668_v56 }
 0x7c9   :  { %3696 = vmatmul.mubr.msk.f32.vlgmr.msra.gmra.mrb[38].mxu0 %vm290_vm2, %v4994_v41  ;;  %3715 = vmatmul.mubr.msk.f32.vlgmr.msra.gmra.mrb[32].mxu1 %vm290_vm2, %v2509_v53 }
 0x7ca   :  { %3717 = vmatprep.mubr.msk.f32.mxu1 %vm290_vm2, %v2510_v35  ;;  %3727 = vmatpush3.msra.mxu0 %v2668_v56 }
 0x7cd   :  { %3718 = vmatmul.mubr.msk.f32.gmra.mrb[34].mxu1 %vm290_vm2, %v2511_v45 }
 0x7ce   :  { %3720 = vmatprep.mubr.msk.f32.mxu1 %vm290_vm2, %v2512_v51 }
 0x7d1   :  { %3721 = vmatmul.mubr.msk.f32.gmra.mrb[36].mxu1 %vm290_vm2, %v2513_v14 }
 0x7d2   :  { %3723 = vmatprep.mubr.msk.f32.mxu1 %vm290_vm2, %v2514_v55 }
 0x88c   :  { %v2334_v57 = vpop.f32.mrb[36].mxu0  ;;  %v2404_v59 = vpop.f32.mrb[30].mxu1 }
 0x88d   :  { %v2480_v60 = vadd.f32 %v2479_v58, %v2334_v57  ;;  %v3659_v61 = vpop.f32.mrb[37].mxu0  ;;  %v3678_v62 = vpop.f32.mrb[31].mxu1  ;;  %v2489_v1 = vadd.f32 %v2488_v0, %v2404_v59 }
 0x88f   :  { %v2903_v63 = vmul.f32 -1.442695, %v2480_v60  ;;  %v2904_v2 = vmul.f32 -1.442695, %v2489_v1 }
 0x891   :  { %4139 = vpow2.f32 %v2903_v63 }
 0x892   :  { %4141 = vpow2.f32 %v2904_v2 }
 0x89b   :  { %v4140_v4 = vpop.eup %4139 }
 0x89c   :  { %v2484_v5 = vadd.f32 1.0, %v4140_v4  ;;  %v2474_v6 = vpop.f32.mrb[38].mxu0  ;;  %v3716_v7 = vpop.f32.mrb[32].mxu1 }
 0x89d   :  { %v2627_v9 = vadd.f32 %v3716_v7, %v5038_v3  ;;  %v3697_v13 = vpop.f32.mrb[39].mxu0  ;;  %v2621_v19 = vpop.f32.mrb[33].mxu1  ;;  %v2475_v22 = vadd.f32 %v4762_v8, %v2474_v6 }
 0x89e   :  { %4143 = vrcp.f32 %v2484_v5  ;;  %v2622_v24 = vadd.f32 %v5038_v3, %v2621_v19  ;;  %v4142_v48 = vpop.eup %4141 }
 0x89f   :  { %v2661_v42 = vmax.f32 %v2627_v9, 0.0  ;;  %v2493_v54 = vadd.f32 1.0, %v4142_v48 }
 0x8a0   :  { %v2660_v29 = vmax.f32 %v2622_v24, 0.0  ;;  %v3719_v34 = vpop.f32.mrb[34].mxu1 }
 0x8a1   :  { %v2637_v10 = vadd.f32 %v3719_v34, %v5038_v3  ;;  %v2631_v11 = vpop.f32.mrb[35].mxu1  ;;  %4145 = vrcp.f32 %v2493_v54 }
 0x8a2   :  { %v2632_v12 = vadd.f32 %v5038_v3, %v2631_v11  ;;  %3728 = vmatprep.mubr.msk.f32.mxu0 %vm2676_vm3, %v2660_v29 }
 0x8a3   :  { %3729 = vmatmul.mubr.msk.f32.vlgmr.msra.gmra.mrb[40].mxu0 %vm2676_vm3, %v2661_v42  ;;  %v2663_v17 = vmax.f32 %v2637_v10, 0.0 }
 0x8a4   :  { %v2662_v15 = vmax.f32 %v2632_v12, 0.0  ;;  %v3722_v16 = vpop.f32.mrb[36].mxu1 }
 0x8a5   :  { %v2647_v18 = vadd.f32 %v3722_v16, %v5038_v3  ;;  %v2641_v20 = vpop.f32.mrb[37].mxu1 }
 0x8a6   :  { %v2642_v21 = vadd.f32 %v5038_v3, %v2641_v20  ;;  %3731 = vmatprep.mubr.msk.f32.mxu0 %vm2676_vm3, %v2662_v15 }
 0x8a7   :  { %3732 = vmatmul.mubr.msk.f32.gmra.mrb[42].mxu0 %vm2676_vm3, %v2663_v17  ;;  %v2665_v26 = vmax.f32 %v2647_v18, 0.0 }
 0x8a8   :  { %v4144_v23 = vpop.eup %4143  ;;  %v2664_v25 = vmax.f32 %v2642_v21, 0.0 }
 0x8a9   :  { %v2498_v36 = vmul.f32 %v4144_v23, %v2475_v22 }
 0x8aa   :  { %3734 = vmatprep.mubr.msk.f32.mxu0 %vm2676_vm3, %v2664_v25 }
 0x8ab   :  { %v2499_v28 = vadd.f32 %v2498_v36, %v2497_v27  ;;  %3735 = vmatmul.mubr.msk.f32.gmra.mrb[44].mxu0 %vm2676_vm3, %v2665_v26  ;;  %v4146_v30 = vpop.eup %4145 }
 0x8ac   :  { %v2501_v31 = vsub.f32 1.0, %v4146_v30  ;;  %v2503_v33 = vmul.f32 %v4146_v30, %v4994_v41 }
 0x8ad   :  { %4147 = vtanh.f32 %v2499_v28 }
 0x8b7   :  { %v4148_v32 = vpop.eup %4147 }
 0x8b8   :  { %v2502_v8 = vmul.f32 %v4148_v32, %v2501_v31 }
 0x8ba   :  { %v2504_v37 = vadd.f32 %v2503_v33, %v2502_v8 }
 0x8bc   :  { %2506 = vst.msk [vmem:[#allocation5 + $0x38] sm:$0xff] %vm290_vm2, %v2504_v37  ;;  %2507 = vst.msk [vmem:[#allocation18] sm:$0xff] %vm290_vm2, %v2504_v37 }
 0x8c3   :  { %v2515_v38 = vld [vmem:[#allocation5 + $0x38] sm:$0xff] }
 0x8c4   :  { %3724 = vmatmul.mubr.msk.f32.gmra.mrb[38].mxu1 %vm290_vm2, %v2515_v38 }
 0x976   :  { %v3730_v43 = vpop.f32.mrb[40].mxu0 }
 0x977   :  { %v2773_v44 = vadd.f32 %v3730_v43, %v2914_v40  ;;  %v2767_v46 = vpop.f32.mrb[41].mxu0 }
 0x978   :  { %v2768_v47 = vadd.f32 %v2914_v40, %v2767_v46 }
 0x979   :  { %2808 = vst.msk [vmem:[%s5124_s16 + $0x8] sm:$0xff] %vm2806_vm4, %v2773_v44 }
 0x97a   :  { %2807 = vst.msk [vmem:[%s5124_s16] sm:$0xff] %vm2806_vm4, %v2768_v47  ;;  %v3733_v41 = vpop.f32.mrb[42].mxu0 }
 0x97b   :  { %v2783_v49 = vadd.f32 %v3733_v41, %v2914_v40  ;;  %v2777_v50 = vpop.f32.mrb[43].mxu0 }
 0x97c   :  { %v2778_v52 = vadd.f32 %v2914_v40, %v2777_v50 }
 0x97d   :  { %2810 = vst.msk [vmem:[%s5124_s16 + $0x18] sm:$0xff] %vm2806_vm4, %v2783_v49 }
 0x97e   :  { %2809 = vst.msk [vmem:[%s5124_s16 + $0x10] sm:$0xff] %vm2806_vm4, %v2778_v52  ;;  %v3736_v39 = vpop.f32.mrb[44].mxu0 }
 0x97f   :  { %v2793_v53 = vadd.f32 %v3736_v39, %v2914_v40  ;;  %v2787_v35 = vpop.f32.mrb[45].mxu0 }
 0x980   :  { %v2788_v45 = vadd.f32 %v2914_v40, %v2787_v35 }
 0x981   :  { %2812 = vst.msk [vmem:[%s5124_s16 + $0x28] sm:$0xff] %vm2806_vm4, %v2793_v53 }
 0x982   :  { %2811 = vst.msk [vmem:[%s5124_s16 + $0x20] sm:$0xff] %vm2806_vm4, %v2788_v45 }
 0x997   :  { %v3725_v51 = vpop.f32.mrb[38].mxu1 }
 0x998   :  { %v2657_v14 = vadd.f32 %v3725_v51, %v5038_v3  ;;  %v2651_v55 = vpop.f32.mrb[39].mxu1 }
 0x999   :  { %v2652_v56 = vadd.f32 %v5038_v3, %v2651_v55 }
 0x99a   :  { %v2667_v58 = vmax.f32 %v2657_v14, 0.0 }
 0x99b   :  { %v2666_v57 = vmax.f32 %v2652_v56, 0.0 }
 0x99d   :  { %3737 = vmatprep.mubr.msk.f32.mxu0 %vm2676_vm3, %v2666_v57 }
 0x99e   :  { %3738 = vmatmul.mubr.msk.f32.gmra.mrb[46].mxu0 %vm2676_vm3, %v2667_v58 }
 0x99f   :  { %4314 = shalt.err (!%p4311_p4)
}
 0x9a0   :  { %s5134_s22 = sld [smem:[#allocation26_spill]] }
 0x9a6   :  { %s4315_s3 = scalar_lea.hbm %s5134_s22, 128 }
 0x9a7   :  { %p4316_p5 = scmp.ne.s32.totalorder %s5134_s22, %s4315_s3  ;;  %p4319_p6 = scmp.lt.u32.totalorder %s4315_s3, %s5134_s22 }
 0x9a9   :  { %p4321_p7 = pnand %p4319_p6, %p4316_p5 }
 0x9ab   :  { %4324 = shalt.err (!%p4321_p7)
}
 0x9ac   :  { %2826 = dma.vmem_to_hbm [thread:$0]  %s2824_s24, 128, %s5134_s22, [#allocation8]  }
 0xa71   :  { %v3739_v59 = vpop.f32.mrb[46].mxu0 }
 0xa72   :  { %v2803_v60 = vadd.f32 %v3739_v59, %v2914_v40  ;;  %v2797_v61 = vpop.f32.mrb[47].mxu0 }
 0xa73   :  { %v2798_v62 = vadd.f32 %v2914_v40, %v2797_v61 }
 0xa74   :  { %2814 = vst.msk [vmem:[%s5124_s16 + $0x38] sm:$0xff] %vm2806_vm4, %v2803_v60 }
 0xa75   :  { %2813 = vst.msk [vmem:[%s5124_s16 + $0x30] sm:$0xff] %vm2806_vm4, %v2798_v62 }
 0xa76   :  { %4333 = dma.done.wait [#allocation8], 128  }
 0xa77   :  { %4334 = vsyncadd [#allocation8], 4294967168 }
 0xa78   :  { %2832 = vsyncpa [#allocation7], 1 }
 0xa79   :  { %2833 = vsyncpa [#allocation10], 1 }
 0xa7a   :  { %2834 = vsyncpa [#allocation13], 1 }
 0xa7b   :  { %2835 = vsyncpa [#allocation16], 1 }
 0xa7c   :  { %2836 = vsyncpa [#allocation8], 1 }

</bundles_post_ra>
